<compile_context>
chip_gen: v5e
topology: v5e:2x2
jax: 0.10.0
libtpu: 0.0.40
codegen_flags: <defaults>
</compile_context>

<pallas_src>
from typing import NamedTuple

import numpy as np
import jax
import jax.numpy as jnp
from jax.experimental import pallas as pl
from jax.experimental.pallas import tpu as pltpu

FC = [512, 256, 128, 64]
LANE = 128                 # lane width
SUBLANE = 8                # sublane width
MIN_SPLIT_ROWS = 512       # don't shrink batch tiles below this when splitting
BF16_OUT_MIN_BATCH = 4096  # batch size at which the padded output goes bf16


def _round_up(n, m):
    return ((n + m - 1) // m) * m


def _vmem_capacity_bytes():
    """Physical VMEM per TensorCore; conservative (v7x) fallback."""
    try:
        return int(pltpu.get_tpu_info().vmem_capacity_bytes)
    except Exception:
        return 64 * 1024 * 1024


# ---------------------------------------------------------------------------
# Kernel: fully fused 5-layer MLP on one batch tile.
# ---------------------------------------------------------------------------
def actor_kernel(x_ref,
                 w1_ref, b1_ref,
                 w2_ref, b2_ref,
                 w3_ref, b3_ref,
                 w4_ref, b4_ref,
                 w5_ref, b5_ref,
                 o_ref):
    # MXU matmuls in bf16 with f32 accumulation; elementwise math in f32.
    h = x_ref[...].astype(jnp.bfloat16)

    h = jnp.dot(h, w1_ref[...], preferred_element_type=jnp.float32)
    h = jnp.maximum(h + b1_ref[...], 0.0).astype(jnp.bfloat16)

    h = jnp.dot(h, w2_ref[...], preferred_element_type=jnp.float32)
    h = jnp.maximum(h + b2_ref[...], 0.0).astype(jnp.bfloat16)

    h = jnp.dot(h, w3_ref[...], preferred_element_type=jnp.float32)
    h = jnp.maximum(h + b3_ref[...], 0.0).astype(jnp.bfloat16)

    h = jnp.dot(h, w4_ref[...], preferred_element_type=jnp.float32)
    h = jnp.maximum(h + b4_ref[...], 0.0).astype(jnp.bfloat16)

    # fc5: Linear + tanh (output padded to a lane-dense 128-wide slab).
    h = jnp.dot(h, w5_ref[...], preferred_element_type=jnp.float32)
    o_ref[...] = jnp.tanh(h + b5_ref[...]).astype(o_ref.dtype)


# ---------------------------------------------------------------------------
# Parameter preprocessing (hoisted out of the per-call path; cache the result).
# ---------------------------------------------------------------------------
class PreparedActorParams(NamedTuple):
    weights: tuple       # 5 bf16 weights, fc5 zero-padded to 128 output lanes
    biases: tuple        # 5 f32 biases (1, out), fc5 zero-padded
    action_size: int
    out_pad: int


def prepare_actor_params(params):
    """params: list of (W, b) with W:(in, out) f32, b:(1, out) f32."""
    action_size = params[-1][0].shape[1]
    out_pad = _round_up(action_size, LANE)

    w5, b5 = params[-1]
    w5p = jnp.zeros((w5.shape[0], out_pad), jnp.float32).at[:, :action_size].set(w5)
    b5p = jnp.zeros((1, out_pad), jnp.float32).at[:, :action_size].set(b5)

    weights = tuple(params[i][0].astype(jnp.bfloat16) for i in range(4)) \
        + (w5p.astype(jnp.bfloat16),)
    biases = tuple(params[i][1].astype(jnp.float32) for i in range(4)) + (b5p,)
    return PreparedActorParams(weights, biases, action_size, out_pad)


# ---------------------------------------------------------------------------
# Forward wrapper
# ---------------------------------------------------------------------------
def _choose_batch_tile(B, tb_cap):
    """Tile rows: single tile for small B, ~B/2 (>=512, <=tb_cap) for big B so
    the grid has >=2 steps and both v7x TensorCores get work."""
    if B < 2 * MIN_SPLIT_ROWS:
        return _round_up(B, SUBLANE)
    return min(tb_cap, _round_up(-(-B // 2), SUBLANE))


def actor_forward(x, params):
    """x: (B, state_size) f32.  params: PreparedActorParams (preferred — cache
    it across calls) or a raw list of (W:(in,out), b:(1,out)) f32 pairs."""
    B, state_size = x.shape
    if not isinstance(params, PreparedActorParams):
        params = prepare_actor_params(params)
    weights, biases = params.weights, params.biases
    action_size, out_pad = params.action_size, params.out_pad

    # Generation-aware tiling + VMEM budget (v5e/v6e: 128 MiB, v7x: 64 MiB/TC).
    vmem_cap = _vmem_capacity_bytes()
    tb_cap = 4096 if vmem_cap >= 100 * (2 ** 20) else 2048
    vmem_limit = int(min((3 * vmem_cap) // 4, 96 * (2 ** 20)))

    TB = _choose_batch_tile(B, tb_cap)
    B_pad = _round_up(B, TB)
    n_steps = B_pad // TB
    xp = x if B_pad == B else jnp.pad(x, ((0, B_pad - B), (0, 0)))

    # Large batches: halve the dominant HBM write by emitting bf16.
    out_dtype = jnp.bfloat16 if B >= BF16_OUT_MIN_BATCH else jnp.float32

    flat = [xp]
    for w, b in zip(weights, biases):
        flat += [w, b]

    def _call(single_buffer_weights):
        # Weights/biases: full-array blocks with a constant index_map so they
        # are DMA'd once and stay resident in VMEM across all batch tiles;
        # single-buffered (the second pipeline buffer would be pure waste).
        wkw = ({"pipeline_mode": pl.Buffered(1)}
               if single_buffer_weights else {})
        in_specs = [pl.BlockSpec((TB, state_size), lambda i: (i, 0))]
        for w, b in zip(weights, biases):
            in_specs.append(pl.BlockSpec(w.shape, lambda i: (0, 0), **wkw))
            in_specs.append(pl.BlockSpec(b.shape, lambda i: (0, 0), **wkw))
        return pl.pallas_call(
            actor_kernel,
            out_shape=jax.ShapeDtypeStruct((B_pad, out_pad), out_dtype),
            grid=(n_steps,),
            in_specs=in_specs,
            out_specs=pl.BlockSpec((TB, out_pad), lambda i: (i, 0)),
            compiler_params=pltpu.CompilerParams(
                dimension_semantics=("parallel",),   # megacore-shard the batch
                vmem_limit_bytes=vmem_limit),
        )(*flat)

    try:
        out = _call(True)       # single-buffered resident weights
    except Exception:
        out = _call(False)      # fallback: default double-buffering

    return out[:B, :action_size].astype(jnp.float32)


# ---------------------------------------------------------------------------
# Init + references (PyTorch-equivalent semantics)
# ---------------------------------------------------------------------------
def init_actor_params(state_size, action_size, seed=0):
    """Mirrors the PyTorch module's reset_parameters(): hidden-layer weights
    ~ U(-1/sqrt(fan), 1/sqrt(fan)) with fan = out_features (hidden_init's
    weight.size()[0] quirk); final layer ~ U(-3e-3, 3e-3).  Biases use
    PyTorch's default Linear bias init U(-1/sqrt(in), 1/sqrt(in))."""
    key = jax.random.PRNGKey(seed)
    dims = [state_size] + FC + [action_size]
    params = []
    for li in range(5):
        d_in, d_out = dims[li], dims[li + 1]
        key, kw, kb = jax.random.split(key, 3)
        lim_w = (1.0 / np.sqrt(d_out)) if li < 4 else 3e-3
        lim_b = 1.0 / np.sqrt(d_in)
        w = jax.random.uniform(kw, (d_in, d_out), jnp.float32, -lim_w, lim_w)
        b = jax.random.uniform(kb, (1, d_out), jnp.float32, -lim_b, lim_b)
        params.append((w, b))
    return params


def actor_reference_f32(x, params):
    """Plain-JAX f32 reference of the PyTorch forward pass."""
    h = x
    for i, (w, b) in enumerate(params):
        h = h @ w + b
        h = jnp.maximum(h, 0.0) if i < 4 else jnp.tanh(h)
    return h


def actor_reference_bf16(x, params):
    """Plain-JAX reference using the kernel's bf16-weight / f32-accumulate math."""
    h = x.astype(jnp.bfloat16)
    for i, (w, b) in enumerate(params):
        h = jnp.dot(h, w.astype(jnp.bfloat16), preferred_element_type=jnp.float32)
        h = h + b.astype(jnp.float32)
        h = jnp.maximum(h, 0.0).astype(jnp.bfloat16) if i < 4 else jnp.tanh(h)
    return h.astype(jnp.float32)


if __name__ == "__main__":
    state_size = 32
    action_size = 4

    params = init_actor_params(state_size, action_size, seed=0)
    prepared = prepare_actor_params(params)   # hoisted; reused across calls

    key = jax.random.PRNGKey(0)
    k0, k1, k2 = jax.random.split(key, 3)

    # 1) Small inference batch (single tile, f32 output) — primary example.
    x_small = jax.random.normal(k0, (8, state_size), jnp.float32)
    out_small = jax.block_until_ready(actor_forward(x_small, prepared))
    assert out_small.shape == (8, action_size)
    assert bool(jnp.all(jnp.abs(out_small) <= 1.0))
    np.testing.assert_allclose(np.asarray(out_small),
                               np.asarray(actor_reference_bf16(x_small, params)),
                               atol=1e-3, rtol=1e-3)
    np.testing.assert_allclose(np.asarray(out_small),
                               np.asarray(actor_reference_f32(x_small, params)),
                               atol=3e-2, rtol=3e-2)

    # 2) Medium batch: exercises the 2-step grid (megacore split) + ragged pad.
    x_med = jax.random.normal(k1, (1203, state_size), jnp.float32)
    out_med = jax.block_until_ready(actor_forward(x_med, prepared))
    assert out_med.shape == (1203, action_size)
    np.testing.assert_allclose(np.asarray(out_med),
                               np.asarray(actor_reference_bf16(x_med, params)),
                               atol=1e-3, rtol=1e-3)

    # 3) Large batch: exercises the bf16 HBM-writeback path (looser tolerance).
    x_big = jax.random.normal(k2, (4096, state_size), jnp.float32)
    out_big = jax.block_until_ready(actor_forward(x_big, prepared))
    assert out_big.shape == (4096, action_size)
    np.testing.assert_allclose(np.asarray(out_big),
                               np.asarray(actor_reference_bf16(x_big, params)),
                               atol=1e-2, rtol=1e-2)

    print("KERNEL_OK")
</pallas_src>

<mosaic_0001>
module attributes {stable_mosaic.version = 11 : i64} {
  func.func @actor_kernel(%arg0: i32, %arg1: memref<8x32xf32, #tpu.memory_space<vmem>>, %arg2: memref<32x512xbf16, #tpu.memory_space<vmem>>, %arg3: memref<1x512xf32, #tpu.memory_space<vmem>>, %arg4: memref<512x256xbf16, #tpu.memory_space<vmem>>, %arg5: memref<1x256xf32, #tpu.memory_space<vmem>>, %arg6: memref<256x128xbf16, #tpu.memory_space<vmem>>, %arg7: memref<1x128xf32, #tpu.memory_space<vmem>>, %arg8: memref<128x64xbf16, #tpu.memory_space<vmem>>, %arg9: memref<1x64xf32, #tpu.memory_space<vmem>>, %arg10: memref<64x128xbf16, #tpu.memory_space<vmem>>, %arg11: memref<1x128xf32, #tpu.memory_space<vmem>>, %arg12: memref<8x128xf32, #tpu.memory_space<vmem>>) attributes {dimension_semantics = [#tpu.dimension_semantics<parallel>], iteration_bounds = array<i64: 1>, scalar_prefetch = 0 : i64, scratch_operands = 0 : i64, tpu.core_type = #tpu.core_type<tc>, window_params = [{transform_indices = @transform_0, window_bounds = array<i64: 8, 32>}, {pipeline_mode = #tpu.pipeline_mode<synchronous>, transform_indices = @transform_1, window_bounds = array<i64: 32, 512>}, {pipeline_mode = #tpu.pipeline_mode<synchronous>, transform_indices = @transform_2, window_bounds = array<i64: 1, 512>}, {pipeline_mode = #tpu.pipeline_mode<synchronous>, transform_indices = @transform_3, window_bounds = array<i64: 512, 256>}, {pipeline_mode = #tpu.pipeline_mode<synchronous>, transform_indices = @transform_4, window_bounds = array<i64: 1, 256>}, {pipeline_mode = #tpu.pipeline_mode<synchronous>, transform_indices = @transform_5, window_bounds = array<i64: 256, 128>}, {pipeline_mode = #tpu.pipeline_mode<synchronous>, transform_indices = @transform_6, window_bounds = array<i64: 1, 128>}, {pipeline_mode = #tpu.pipeline_mode<synchronous>, transform_indices = @transform_7, window_bounds = array<i64: 128, 64>}, {pipeline_mode = #tpu.pipeline_mode<synchronous>, transform_indices = @transform_8, window_bounds = array<i64: 1, 64>}, {pipeline_mode = #tpu.pipeline_mode<synchronous>, transform_indices = @transform_9, window_bounds = array<i64: 64, 128>}, {pipeline_mode = #tpu.pipeline_mode<synchronous>, transform_indices = @transform_10, window_bounds = array<i64: 1, 128>}, {transform_indices = @transform_11, window_bounds = array<i64: 8, 128>}]} {
    %c0 = arith.constant 0 : index
    %c0_0 = arith.constant 0 : index
    %0 = vector.load %arg1[%c0, %c0_0] : memref<8x32xf32, #tpu.memory_space<vmem>>, vector<8x32xf32>
    %1 = arith.truncf %0 : vector<8x32xf32> to vector<8x32xbf16>
    %c0_1 = arith.constant 0 : index
    %c0_2 = arith.constant 0 : index
    %2 = vector.load %arg2[%c0_1, %c0_2] : memref<32x512xbf16, #tpu.memory_space<vmem>>, vector<32x512xbf16>
    %cst = arith.constant dense<0.000000e+00> : vector<8x512xf32>
    %3 = tpu.matmul %1, %2, %cst {dimension_numbers = #tpu.dot_dimension_numbers<[1], [0], [0], [1], [0, 0, 1, 1], [], []>} : vector<8x32xbf16>, vector<32x512xbf16>, vector<8x512xf32> -> vector<8x512xf32>
    %c0_3 = arith.constant 0 : index
    %c0_4 = arith.constant 0 : index
    %4 = vector.load %arg3[%c0_3, %c0_4] : memref<1x512xf32, #tpu.memory_space<vmem>>, vector<1x512xf32>
    %5 = vector.broadcast %4 : vector<1x512xf32> to vector<8x512xf32>
    %6 = arith.addf %3, %5 : vector<8x512xf32>
    %cst_5 = arith.constant 0.000000e+00 : f32
    %7 = vector.broadcast %cst_5 : f32 to vector<8x512xf32>
    %8 = arith.maximumf %6, %7 : vector<8x512xf32>
    %9 = arith.truncf %8 : vector<8x512xf32> to vector<8x512xbf16>
    %c0_6 = arith.constant 0 : index
    %c0_7 = arith.constant 0 : index
    %10 = vector.load %arg4[%c0_6, %c0_7] : memref<512x256xbf16, #tpu.memory_space<vmem>>, vector<512x256xbf16>
    %cst_8 = arith.constant dense<0.000000e+00> : vector<8x256xf32>
    %11 = tpu.matmul %9, %10, %cst_8 {dimension_numbers = #tpu.dot_dimension_numbers<[1], [0], [0], [1], [0, 0, 1, 1], [], []>} : vector<8x512xbf16>, vector<512x256xbf16>, vector<8x256xf32> -> vector<8x256xf32>
    %c0_9 = arith.constant 0 : index
    %c0_10 = arith.constant 0 : index
    %12 = vector.load %arg5[%c0_9, %c0_10] : memref<1x256xf32, #tpu.memory_space<vmem>>, vector<1x256xf32>
    %13 = vector.broadcast %12 : vector<1x256xf32> to vector<8x256xf32>
    %14 = arith.addf %11, %13 : vector<8x256xf32>
    %cst_11 = arith.constant 0.000000e+00 : f32
    %15 = vector.broadcast %cst_11 : f32 to vector<8x256xf32>
    %16 = arith.maximumf %14, %15 : vector<8x256xf32>
    %17 = arith.truncf %16 : vector<8x256xf32> to vector<8x256xbf16>
    %c0_12 = arith.constant 0 : index
    %c0_13 = arith.constant 0 : index
    %18 = vector.load %arg6[%c0_12, %c0_13] : memref<256x128xbf16, #tpu.memory_space<vmem>>, vector<256x128xbf16>
    %cst_14 = arith.constant dense<0.000000e+00> : vector<8x128xf32>
    %19 = tpu.matmul %17, %18, %cst_14 {dimension_numbers = #tpu.dot_dimension_numbers<[1], [0], [0], [1], [0, 0, 1, 1], [], []>} : vector<8x256xbf16>, vector<256x128xbf16>, vector<8x128xf32> -> vector<8x128xf32>
    %c0_15 = arith.constant 0 : index
    %c0_16 = arith.constant 0 : index
    %20 = vector.load %arg7[%c0_15, %c0_16] : memref<1x128xf32, #tpu.memory_space<vmem>>, vector<1x128xf32>
    %21 = vector.broadcast %20 : vector<1x128xf32> to vector<8x128xf32>
    %22 = arith.addf %19, %21 : vector<8x128xf32>
    %cst_17 = arith.constant 0.000000e+00 : f32
    %23 = vector.broadcast %cst_17 : f32 to vector<8x128xf32>
    %24 = arith.maximumf %22, %23 : vector<8x128xf32>
    %25 = arith.truncf %24 : vector<8x128xf32> to vector<8x128xbf16>
    %c0_18 = arith.constant 0 : index
    %c0_19 = arith.constant 0 : index
    %26 = vector.load %arg8[%c0_18, %c0_19] : memref<128x64xbf16, #tpu.memory_space<vmem>>, vector<128x64xbf16>
    %cst_20 = arith.constant dense<0.000000e+00> : vector<8x64xf32>
    %27 = tpu.matmul %25, %26, %cst_20 {dimension_numbers = #tpu.dot_dimension_numbers<[1], [0], [0], [1], [0, 0, 1, 1], [], []>} : vector<8x128xbf16>, vector<128x64xbf16>, vector<8x64xf32> -> vector<8x64xf32>
    %c0_21 = arith.constant 0 : index
    %c0_22 = arith.constant 0 : index
    %28 = vector.load %arg9[%c0_21, %c0_22] : memref<1x64xf32, #tpu.memory_space<vmem>>, vector<1x64xf32>
    %29 = vector.broadcast %28 : vector<1x64xf32> to vector<8x64xf32>
    %30 = arith.addf %27, %29 : vector<8x64xf32>
    %cst_23 = arith.constant 0.000000e+00 : f32
    %31 = vector.broadcast %cst_23 : f32 to vector<8x64xf32>
    %32 = arith.maximumf %30, %31 : vector<8x64xf32>
    %33 = arith.truncf %32 : vector<8x64xf32> to vector<8x64xbf16>
    %c0_24 = arith.constant 0 : index
    %c0_25 = arith.constant 0 : index
    %34 = vector.load %arg10[%c0_24, %c0_25] : memref<64x128xbf16, #tpu.memory_space<vmem>>, vector<64x128xbf16>
    %cst_26 = arith.constant dense<0.000000e+00> : vector<8x128xf32>
    %35 = tpu.matmul %33, %34, %cst_26 {dimension_numbers = #tpu.dot_dimension_numbers<[1], [0], [0], [1], [0, 0, 1, 1], [], []>} : vector<8x64xbf16>, vector<64x128xbf16>, vector<8x128xf32> -> vector<8x128xf32>
    %c0_27 = arith.constant 0 : index
    %c0_28 = arith.constant 0 : index
    %36 = vector.load %arg11[%c0_27, %c0_28] : memref<1x128xf32, #tpu.memory_space<vmem>>, vector<1x128xf32>
    %37 = vector.broadcast %36 : vector<1x128xf32> to vector<8x128xf32>
    %38 = arith.addf %35, %37 : vector<8x128xf32>
    %39 = math.tanh %38 : vector<8x128xf32>
    %c0_29 = arith.constant 0 : index
    %c0_30 = arith.constant 0 : index
    %40 = vector.load %arg12[%c0_29, %c0_30] : memref<8x128xf32, #tpu.memory_space<vmem>>, vector<8x128xf32>
    tpu.vector_store %arg12[%c0_29, %c0_30], %39 {strides = array<i32>} : memref<8x128xf32, #tpu.memory_space<vmem>>, vector<8x128xf32>,
    return
  }
  func.func @transform_0(%arg0: i32) -> (i32, i32) {
    %c0_i32 = arith.constant 0 : i32
    %c0_i32_0 = arith.constant 0 : i32
    return %arg0, %c0_i32 : i32, i32
  }
  func.func @transform_1(%arg0: i32) -> (i32, i32) {
    %c0_i32 = arith.constant 0 : i32
    %c0_i32_0 = arith.constant 0 : i32
    %c0_i32_1 = arith.constant 0 : i32
    return %c0_i32, %c0_i32_0 : i32, i32
  }
  func.func @transform_2(%arg0: i32) -> (i32, i32) {
    %c0_i32 = arith.constant 0 : i32
    %c0_i32_0 = arith.constant 0 : i32
    %c0_i32_1 = arith.constant 0 : i32
    return %c0_i32, %c0_i32_0 : i32, i32
  }
  func.func @transform_3(%arg0: i32) -> (i32, i32) {
    %c0_i32 = arith.constant 0 : i32
    %c0_i32_0 = arith.constant 0 : i32
    %c0_i32_1 = arith.constant 0 : i32
    return %c0_i32, %c0_i32_0 : i32, i32
  }
  func.func @transform_4(%arg0: i32) -> (i32, i32) {
    %c0_i32 = arith.constant 0 : i32
    %c0_i32_0 = arith.constant 0 : i32
    %c0_i32_1 = arith.constant 0 : i32
    return %c0_i32, %c0_i32_0 : i32, i32
  }
  func.func @transform_5(%arg0: i32) -> (i32, i32) {
    %c0_i32 = arith.constant 0 : i32
    %c0_i32_0 = arith.constant 0 : i32
    %c0_i32_1 = arith.constant 0 : i32
    return %c0_i32, %c0_i32_0 : i32, i32
  }
  func.func @transform_6(%arg0: i32) -> (i32, i32) {
    %c0_i32 = arith.constant 0 : i32
    %c0_i32_0 = arith.constant 0 : i32
    %c0_i32_1 = arith.constant 0 : i32
    return %c0_i32, %c0_i32_0 : i32, i32
  }
  func.func @transform_7(%arg0: i32) -> (i32, i32) {
    %c0_i32 = arith.constant 0 : i32
    %c0_i32_0 = arith.constant 0 : i32
    %c0_i32_1 = arith.constant 0 : i32
    return %c0_i32, %c0_i32_0 : i32, i32
  }
  func.func @transform_8(%arg0: i32) -> (i32, i32) {
    %c0_i32 = arith.constant 0 : i32
    %c0_i32_0 = arith.constant 0 : i32
    %c0_i32_1 = arith.constant 0 : i32
    return %c0_i32, %c0_i32_0 : i32, i32
  }
  func.func @transform_9(%arg0: i32) -> (i32, i32) {
    %c0_i32 = arith.constant 0 : i32
    %c0_i32_0 = arith.constant 0 : i32
    %c0_i32_1 = arith.constant 0 : i32
    return %c0_i32, %c0_i32_0 : i32, i32
  }
  func.func @transform_10(%arg0: i32) -> (i32, i32) {
    %c0_i32 = arith.constant 0 : i32
    %c0_i32_0 = arith.constant 0 : i32
    %c0_i32_1 = arith.constant 0 : i32
    return %c0_i32, %c0_i32_0 : i32, i32
  }
  func.func @transform_11(%arg0: i32) -> (i32, i32) {
    %c0_i32 = arith.constant 0 : i32
    %c0_i32_0 = arith.constant 0 : i32
    return %arg0, %c0_i32 : i32, i32
  }
}

module attributes {stable_mosaic.version = 11 : i64} {
  func.func @actor_kernel(%arg0: i32, %arg1: memref<8x32xf32, #tpu.memory_space<vmem>>, %arg2: memref<32x512xbf16, #tpu.memory_space<vmem>>, %arg3: memref<1x512xf32, #tpu.memory_space<vmem>>, %arg4: memref<512x256xbf16, #tpu.memory_space<vmem>>, %arg5: memref<1x256xf32, #tpu.memory_space<vmem>>, %arg6: memref<256x128xbf16, #tpu.memory_space<vmem>>, %arg7: memref<1x128xf32, #tpu.memory_space<vmem>>, %arg8: memref<128x64xbf16, #tpu.memory_space<vmem>>, %arg9: memref<1x64xf32, #tpu.memory_space<vmem>>, %arg10: memref<64x128xbf16, #tpu.memory_space<vmem>>, %arg11: memref<1x128xf32, #tpu.memory_space<vmem>>, %arg12: memref<8x128xf32, #tpu.memory_space<vmem>>) attributes {dimension_semantics = [#tpu.dimension_semantics<parallel>], iteration_bounds = array<i64: 1>, scalar_prefetch = 0 : i64, scratch_operands = 0 : i64, tpu.core_type = #tpu.core_type<tc>, window_params = [{transform_indices = @transform_0, window_bounds = array<i64: 8, 32>}, {pipeline_mode = #tpu.pipeline_mode<synchronous>, transform_indices = @transform_1, window_bounds = array<i64: 32, 512>}, {pipeline_mode = #tpu.pipeline_mode<synchronous>, transform_indices = @transform_2, window_bounds = array<i64: 1, 512>}, {pipeline_mode = #tpu.pipeline_mode<synchronous>, transform_indices = @transform_3, window_bounds = array<i64: 512, 256>}, {pipeline_mode = #tpu.pipeline_mode<synchronous>, transform_indices = @transform_4, window_bounds = array<i64: 1, 256>}, {pipeline_mode = #tpu.pipeline_mode<synchronous>, transform_indices = @transform_5, window_bounds = array<i64: 256, 128>}, {pipeline_mode = #tpu.pipeline_mode<synchronous>, transform_indices = @transform_6, window_bounds = array<i64: 1, 128>}, {pipeline_mode = #tpu.pipeline_mode<synchronous>, transform_indices = @transform_7, window_bounds = array<i64: 128, 64>}, {pipeline_mode = #tpu.pipeline_mode<synchronous>, transform_indices = @transform_8, window_bounds = array<i64: 1, 64>}, {pipeline_mode = #tpu.pipeline_mode<synchronous>, transform_indices = @transform_9, window_bounds = array<i64: 64, 128>}, {pipeline_mode = #tpu.pipeline_mode<synchronous>, transform_indices = @transform_10, window_bounds = array<i64: 1, 128>}, {transform_indices = @transform_11, window_bounds = array<i64: 8, 128>}]} {
    %c0 = arith.constant 0 : index
    %c0_0 = arith.constant 0 : index
    %0 = vector.load %arg1[%c0, %c0_0] : memref<8x32xf32, #tpu.memory_space<vmem>>, vector<8x32xf32>
    %1 = arith.truncf %0 : vector<8x32xf32> to vector<8x32xbf16>
    %c0_1 = arith.constant 0 : index
    %c0_2 = arith.constant 0 : index
    %2 = vector.load %arg2[%c0_1, %c0_2] : memref<32x512xbf16, #tpu.memory_space<vmem>>, vector<32x512xbf16>
    %cst = arith.constant dense<0.000000e+00> : vector<8x512xf32>
    %3 = tpu.matmul %1, %2, %cst {dimension_numbers = #tpu.dot_dimension_numbers<[1], [0], [0], [1], [0, 0, 1, 1], [], []>} : vector<8x32xbf16>, vector<32x512xbf16>, vector<8x512xf32> -> vector<8x512xf32>
    %c0_3 = arith.constant 0 : index
    %c0_4 = arith.constant 0 : index
    %4 = vector.load %arg3[%c0_3, %c0_4] : memref<1x512xf32, #tpu.memory_space<vmem>>, vector<1x512xf32>
    %5 = vector.broadcast %4 : vector<1x512xf32> to vector<8x512xf32>
    %6 = arith.addf %3, %5 : vector<8x512xf32>
    %cst_5 = arith.constant 0.000000e+00 : f32
    %7 = vector.broadcast %cst_5 : f32 to vector<8x512xf32>
    %8 = arith.maximumf %6, %7 : vector<8x512xf32>
    %9 = arith.truncf %8 : vector<8x512xf32> to vector<8x512xbf16>
    %c0_6 = arith.constant 0 : index
    %c0_7 = arith.constant 0 : index
    %10 = vector.load %arg4[%c0_6, %c0_7] : memref<512x256xbf16, #tpu.memory_space<vmem>>, vector<512x256xbf16>
    %cst_8 = arith.constant dense<0.000000e+00> : vector<8x256xf32>
    %11 = tpu.matmul %9, %10, %cst_8 {dimension_numbers = #tpu.dot_dimension_numbers<[1], [0], [0], [1], [0, 0, 1, 1], [], []>} : vector<8x512xbf16>, vector<512x256xbf16>, vector<8x256xf32> -> vector<8x256xf32>
    %c0_9 = arith.constant 0 : index
    %c0_10 = arith.constant 0 : index
    %12 = vector.load %arg5[%c0_9, %c0_10] : memref<1x256xf32, #tpu.memory_space<vmem>>, vector<1x256xf32>
    %13 = vector.broadcast %12 : vector<1x256xf32> to vector<8x256xf32>
    %14 = arith.addf %11, %13 : vector<8x256xf32>
    %cst_11 = arith.constant 0.000000e+00 : f32
    %15 = vector.broadcast %cst_11 : f32 to vector<8x256xf32>
    %16 = arith.maximumf %14, %15 : vector<8x256xf32>
    %17 = arith.truncf %16 : vector<8x256xf32> to vector<8x256xbf16>
    %c0_12 = arith.constant 0 : index
    %c0_13 = arith.constant 0 : index
    %18 = vector.load %arg6[%c0_12, %c0_13] : memref<256x128xbf16, #tpu.memory_space<vmem>>, vector<256x128xbf16>
    %cst_14 = arith.constant dense<0.000000e+00> : vector<8x128xf32>
    %19 = tpu.matmul %17, %18, %cst_14 {dimension_numbers = #tpu.dot_dimension_numbers<[1], [0], [0], [1], [0, 0, 1, 1], [], []>} : vector<8x256xbf16>, vector<256x128xbf16>, vector<8x128xf32> -> vector<8x128xf32>
    %c0_15 = arith.constant 0 : index
    %c0_16 = arith.constant 0 : index
    %20 = vector.load %arg7[%c0_15, %c0_16] : memref<1x128xf32, #tpu.memory_space<vmem>>, vector<1x128xf32>
    %21 = vector.broadcast %20 : vector<1x128xf32> to vector<8x128xf32>
    %22 = arith.addf %19, %21 : vector<8x128xf32>
    %cst_17 = arith.constant 0.000000e+00 : f32
    %23 = vector.broadcast %cst_17 : f32 to vector<8x128xf32>
    %24 = arith.maximumf %22, %23 : vector<8x128xf32>
    %25 = arith.truncf %24 : vector<8x128xf32> to vector<8x128xbf16>
    %c0_18 = arith.constant 0 : index
    %c0_19 = arith.constant 0 : index
    %26 = vector.load %arg8[%c0_18, %c0_19] : memref<128x64xbf16, #tpu.memory_space<vmem>>, vector<128x64xbf16>
    %cst_20 = arith.constant dense<0.000000e+00> : vector<8x64xf32>
    %27 = tpu.matmul %25, %26, %cst_20 {dimension_numbers = #tpu.dot_dimension_numbers<[1], [0], [0], [1], [0, 0, 1, 1], [], []>} : vector<8x128xbf16>, vector<128x64xbf16>, vector<8x64xf32> -> vector<8x64xf32>
    %c0_21 = arith.constant 0 : index
    %c0_22 = arith.constant 0 : index
    %28 = vector.load %arg9[%c0_21, %c0_22] : memref<1x64xf32, #tpu.memory_space<vmem>>, vector<1x64xf32>
    %29 = vector.broadcast %28 : vector<1x64xf32> to vector<8x64xf32>
    %30 = arith.addf %27, %29 : vector<8x64xf32>
    %cst_23 = arith.constant 0.000000e+00 : f32
    %31 = vector.broadcast %cst_23 : f32 to vector<8x64xf32>
    %32 = arith.maximumf %30, %31 : vector<8x64xf32>
    %33 = arith.truncf %32 : vector<8x64xf32> to vector<8x64xbf16>
    %c0_24 = arith.constant 0 : index
    %c0_25 = arith.constant 0 : index
    %34 = vector.load %arg10[%c0_24, %c0_25] : memref<64x128xbf16, #tpu.memory_space<vmem>>, vector<64x128xbf16>
    %cst_26 = arith.constant dense<0.000000e+00> : vector<8x128xf32>
    %35 = tpu.matmul %33, %34, %cst_26 {dimension_numbers = #tpu.dot_dimension_numbers<[1], [0], [0], [1], [0, 0, 1, 1], [], []>} : vector<8x64xbf16>, vector<64x128xbf16>, vector<8x128xf32> -> vector<8x128xf32>
    %c0_27 = arith.constant 0 : index
    %c0_28 = arith.constant 0 : index
    %36 = vector.load %arg11[%c0_27, %c0_28] : memref<1x128xf32, #tpu.memory_space<vmem>>, vector<1x128xf32>
    %37 = vector.broadcast %36 : vector<1x128xf32> to vector<8x128xf32>
    %38 = arith.addf %35, %37 : vector<8x128xf32>
    %39 = math.tanh %38 : vector<8x128xf32>
    %c0_29 = arith.constant 0 : index
    %c0_30 = arith.constant 0 : index
    %40 = vector.load %arg12[%c0_29, %c0_30] : memref<8x128xf32, #tpu.memory_space<vmem>>, vector<8x128xf32>
    tpu.vector_store %arg12[%c0_29, %c0_30], %39 {strides = array<i32>} : memref<8x128xf32, #tpu.memory_space<vmem>>, vector<8x128xf32>,
    return
  }
  func.func @transform_0(%arg0: i32) -> (i32, i32) {
    %c0_i32 = arith.constant 0 : i32
    %c0_i32_0 = arith.constant 0 : i32
    return %arg0, %c0_i32 : i32, i32
  }
  func.func @transform_1(%arg0: i32) -> (i32, i32) {
    %c0_i32 = arith.constant 0 : i32
    %c0_i32_0 = arith.constant 0 : i32
    %c0_i32_1 = arith.constant 0 : i32
    return %c0_i32, %c0_i32_0 : i32, i32
  }
  func.func @transform_2(%arg0: i32) -> (i32, i32) {
    %c0_i32 = arith.constant 0 : i32
    %c0_i32_0 = arith.constant 0 : i32
    %c0_i32_1 = arith.constant 0 : i32
    return %c0_i32, %c0_i32_0 : i32, i32
  }
  func.func @transform_3(%arg0: i32) -> (i32, i32) {
    %c0_i32 = arith.constant 0 : i32
    %c0_i32_0 = arith.constant 0 : i32
    %c0_i32_1 = arith.constant 0 : i32
    return %c0_i32, %c0_i32_0 : i32, i32
  }
  func.func @transform_4(%arg0: i32) -> (i32, i32) {
    %c0_i32 = arith.constant 0 : i32
    %c0_i32_0 = arith.constant 0 : i32
    %c0_i32_1 = arith.constant 0 : i32
    return %c0_i32, %c0_i32_0 : i32, i32
  }
  func.func @transform_5(%arg0: i32) -> (i32, i32) {
    %c0_i32 = arith.constant 0 : i32
    %c0_i32_0 = arith.constant 0 : i32
    %c0_i32_1 = arith.constant 0 : i32
    return %c0_i32, %c0_i32_0 : i32, i32
  }
  func.func @transform_6(%arg0: i32) -> (i32, i32) {
    %c0_i32 = arith.constant 0 : i32
    %c0_i32_0 = arith.constant 0 : i32
    %c0_i32_1 = arith.constant 0 : i32
    return %c0_i32, %c0_i32_0 : i32, i32
  }
  func.func @transform_7(%arg0: i32) -> (i32, i32) {
    %c0_i32 = arith.constant 0 : i32
    %c0_i32_0 = arith.constant 0 : i32
    %c0_i32_1 = arith.constant 0 : i32
    return %c0_i32, %c0_i32_0 : i32, i32
  }
  func.func @transform_8(%arg0: i32) -> (i32, i32) {
    %c0_i32 = arith.constant 0 : i32
    %c0_i32_0 = arith.constant 0 : i32
    %c0_i32_1 = arith.constant 0 : i32
    return %c0_i32, %c0_i32_0 : i32, i32
  }
  func.func @transform_9(%arg0: i32) -> (i32, i32) {
    %c0_i32 = arith.constant 0 : i32
    %c0_i32_0 = arith.constant 0 : i32
    %c0_i32_1 = arith.constant 0 : i32
    return %c0_i32, %c0_i32_0 : i32, i32
  }
  func.func @transform_10(%arg0: i32) -> (i32, i32) {
    %c0_i32 = arith.constant 0 : i32
    %c0_i32_0 = arith.constant 0 : i32
    %c0_i32_1 = arith.constant 0 : i32
    return %c0_i32, %c0_i32_0 : i32, i32
  }
  func.func @transform_11(%arg0: i32) -> (i32, i32) {
    %c0_i32 = arith.constant 0 : i32
    %c0_i32_0 = arith.constant 0 : i32
    return %arg0, %c0_i32 : i32, i32
  }
}

</mosaic_0001>

<bundles_post_ra>
// kernel: tpu_custom_call.1
= control target key start
LH: loop header
LB: loop body
LE: loop exit
PB: predicated region body
PF: predicated region fallthrough
CT: control target
= control target key end

     0   :  { %16 = vsyncpa [#allocation3], 0  ;;  %s1869_s0 = inlined_call_operand.hbm [shape: f32[8,32], index: 0, kind: input, shape index: {}]   ;;  %s1870_s1 = inlined_call_operand.vmem [shape: bf16[32,512], index: 1, kind: input, shape index: {}]   ;;  %s1871_s2 = inlined_call_operand.hbm [shape: f32[1,512], index: 2, kind: input, shape index: {}]   ;;  %s1872_s3 = inlined_call_operand.hbm [shape: bf16[512,256], index: 3, kind: input, shape index: {}]   ;;  %s1873_s4 = inlined_call_operand.vmem [shape: f32[1,256], index: 4, kind: input, shape index: {}]   ;;  %s1874_s5 = inlined_call_operand.hbm [shape: bf16[256,128], index: 5, kind: input, shape index: {}]   ;;  %s1875_s6 = inlined_call_operand.vmem [shape: f32[1,128], index: 6, kind: input, shape index: {}]   ;;  %s1876_s7 = inlined_call_operand.vmem [shape: bf16[128,64], index: 7, kind: input, shape index: {}]   ;;  %s1877_s8 = inlined_call_operand.vmem [shape: f32[1,64], index: 8, kind: input, shape index: {}]   ;;  %s1878_s9 = inlined_call_operand.vmem [shape: bf16[64,128], index: 9, kind: input, shape index: {}]   ;;  %s1879_s10 = inlined_call_operand.vmem [shape: f32[1,128], index: 10, kind: input, shape index: {}]   ;;  %s1880_s11 = inlined_call_operand.hbm [shape: f32[8,128], index: 11, kind: output, shape index: {}]  }
   0x1   :  { %17 = vsyncpa [#allocation6], 0 }
   0x2   :  { %18 = vsyncpa [#allocation9], 0  ;;  %s38_s19 = sshll.u32 %s1871_s2, 4  ;;  %s39_s19 = int_to_ptr.hbm [resolvable:$true] %s38_s19 }
   0x3   :  { %19 = vsyncpa [#allocation4], 0  ;;  %s1685_s20 = smov [#allocation5]   ;;  %s25_s24 = sshll.u32 %s1869_s0, 4  ;;  %s26_s24 = int_to_ptr.hbm [resolvable:$true] %s25_s24 }
   0x4   :  { %s40_s21 = sshll.u32 %s1685_s20, 4  ;;  %s1686_s25 = smov [#allocation2]   ;;  %s41_s21 = int_to_ptr.vmem [resolvable:$true] %s40_s21 }
   0x5   :  { %43 = dma.hbm_to_vmem [thread:$0]  %s39_s19, 64, %s41_s21, [#allocation6]  }
   0x6   :  { %s27_s26 = sshll.u32 %s1686_s25, 4  ;;  %s48_s29 = sshll.u32 %s1872_s3, 4  ;;  %s28_s26 = int_to_ptr.vmem [resolvable:$true] %s27_s26  ;;  %s49_s29 = int_to_ptr.hbm [resolvable:$true] %s48_s29 }
   0x7   :  { %30 = dma.hbm_to_vmem [thread:$0]  %s26_s24, 128, %s28_s26, [#allocation3]  }
   0x8   :  { %s1687_s2 = smov [#allocation7]   ;;  %s63_s14 = sshll.u32 %s1874_s5, 4  ;;  %s64_s14 = int_to_ptr.hbm [resolvable:$true] %s63_s14 }
   0x9   :  { %s50_s30 = sshll.u32 %s1687_s2, 4  ;;  %s1688_s15 = smov 128   ;;  %s51_s30 = int_to_ptr.vmem [resolvable:$true] %s50_s30 }
   0xa   :  { %s1689_s0 = smov 8   ;;  %s1690_s16 = smov [#allocation8]  }
   0xb   :  { %56 = dma.hbm_to_vmem [thread:$0]  %s49_s29, 8192, %s51_s30, [#allocation6], %s1688_s15, %s1688_s15, %s1689_s0  }
   0xc   :  { %s65_s17 = sshll.u32 %s1690_s16, 4  ;;  %s1691_s18 = smov 64   ;;  %s66_s17 = int_to_ptr.vmem [resolvable:$true] %s65_s17 }
   0xd   :  { %s1692_s19 = smov 4  }
   0xe   :  { %71 = dma.hbm_to_vmem [thread:$0]  %s64_s14, 2048, %s66_s17, [#allocation9], %s1691_s18, %s1691_s18, %s1692_s19  }
   0xf   :  { %1677 = dma.done.wait [#allocation3], 128  }
  0x10   :  { %1678 = vsyncadd [#allocation3], 4294967168 }
  0x11   :  { %1679 = dma.done.wait [#allocation6], 8256  }
  0x12   :  { %1680 = vsyncadd [#allocation6], 4294959040 }
  0x13   :  { %1681 = dma.done.wait [#allocation9], 2048  }
  0x14   :  { %1682 = vsyncadd [#allocation9], 4294965248  ;;  %v1056_v0 = vld [vmem:[%s1870_s1 + $0x20] sm:$0xf]  ;;  %v1449_v1 = vld [vmem:[%s1870_s1 + $0x2c] sm:$0xf0] }
  0x15   :  { %v1447_v2 = vld [vmem:[%s1870_s1 + $0x24] sm:$0xf]  ;;  %v1057_v3 = vor.u32 %v1449_v1, %v1056_v0  ;;  %v1058_v4 = vld [vmem:[%s1870_s1 + $0x30] sm:$0xf0]  ;;  %v1064_v5 = vld [vmem:[%s1870_s1 + $0x28] sm:$0xf] }
  0x16   :  { %v1450_v6 = vld [vmem:[%s1870_s1 + $0x34] sm:$0xf0]  ;;  %v1061_v7 = vor.u32 %v1447_v2, %v1058_v4  ;;  %v1448_v9 = vld [vmem:[%s1870_s1 + $0x2c] sm:$0xf]  ;;  %v1066_v10 = vld [vmem:[%s1870_s1 + $0x38] sm:$0xf0] }
  0x17   :  { %v1065_v8 = vor.u32 %v1450_v6, %v1064_v5  ;;  %v1040_v11 = vld [vmem:[%s1870_s1] sm:$0xf]  ;;  %169 = vmatpush.bf16.msra.mxu0 %v1057_v3  ;;  %v1069_v12 = vor.u32 %v1448_v9, %v1066_v10  ;;  %v1445_v13 = vld [vmem:[%s1870_s1 + $0xc] sm:$0xf0]  ;;  %v1443_v14 = vld [vmem:[%s1870_s1 + $0x4] sm:$0xf] }
  0x18   :  { %v1042_v15 = vld [vmem:[%s1870_s1 + $0x10] sm:$0xf0]  ;;  %182 = vmatpush.bf16.msra.mxu1 %v1061_v7  ;;  %v1041_v16 = vor.u32 %v1445_v13, %v1040_v11  ;;  %v1048_v18 = vld [vmem:[%s1870_s1 + $0x8] sm:$0xf]  ;;  %v1446_v19 = vld [vmem:[%s1870_s1 + $0x14] sm:$0xf0] }
  0x19   :  { %195 = vmatpush.bf16.msra.mxu2 %v1065_v8  ;;  %v1045_v17 = vor.u32 %v1443_v14, %v1042_v15  ;;  %v1444_v20 = vld [vmem:[%s1870_s1 + $0xc] sm:$0xf]  ;;  %208 = vmatpush.bf16.msra.mxu3 %v1069_v12  ;;  %v1049_v21 = vor.u32 %v1446_v19, %v1048_v18  ;;  %v1050_v22 = vld [vmem:[%s1870_s1 + $0x18] sm:$0xf0]  ;;  %v99_v23 = vld [vmem:[#allocation2] sm:$0xff]  ;;  %vm159_vm0 = vcmask 261120  }
  0x1a   :  { %v1132_v24 = vld [vmem:[#allocation7 + $0x70] sm:$0xf]  ;;  %v1053_v25 = vor.u32 %v1444_v20, %v1050_v22  ;;  %v100_v26 = vpack.c.bf16 %v99_v23, %v99_v23  ;;  %v1466_v27 = vld [vmem:[#allocation7 + $0x74] sm:$0xf0]  ;;  %v1124_v32 = vld [vmem:[#allocation7 + $0x60] sm:$0xf] }
  0x1b   :  { %v1196_v28 = vld [vmem:[#allocation7 + $0xf0] sm:$0xf]  ;;  %v1482_v29 = vld [vmem:[#allocation7 + $0xf4] sm:$0xf0]  ;;  %170 = vmatpush.bf16.msra.mxu0 %v1041_v16  ;;  %v1133_v30 = vor.u32 %v1466_v27, %v1132_v24  ;;  %v1464_v33 = vld [vmem:[#allocation7 + $0x64] sm:$0xf0] }
  0x1c   :  { %v1197_v31 = vor.u32 %v1482_v29, %v1196_v28  ;;  %v1188_v34 = vld [vmem:[#allocation7 + $0xe0] sm:$0xf]  ;;  %183 = vmatpush.bf16.msra.mxu1 %v1045_v17  ;;  %v1480_v35 = vld [vmem:[#allocation7 + $0xe4] sm:$0xf0]  ;;  %v1260_v36 = vld [vmem:[#allocation7 + $0x170] sm:$0xf]  ;;  %v1125_v38 = vor.u32 %v1464_v33, %v1124_v32 }
  0x1d   :  { %196 = vmatpush.bf16.msra.mxu2 %v1049_v21  ;;  %v1498_v37 = vld [vmem:[#allocation7 + $0x174] sm:$0xf0]  ;;  %209 = vmatpush.bf16.msra.mxu3 %v1053_v25  ;;  %v1324_v40 = vld [vmem:[#allocation7 + $0x1f0] sm:$0xf]  ;;  %v1189_v43 = vor.u32 %v1480_v35, %v1188_v34  ;;  %v1252_v48 = vld [vmem:[#allocation7 + $0x160] sm:$0xf] }
  0x1e   :  { %v1261_v39 = vor.u32 %v1498_v37, %v1260_v36  ;;  %v1514_v41 = vld [vmem:[#allocation7 + $0x1f4] sm:$0xf0]  ;;  %v1116_v42 = vld [vmem:[#allocation7 + $0x50] sm:$0xf]  ;;  %1070 = vmatmul.msk.bf16.vlgmr.msra.gmra.mxu0 %vm159_vm0, %v100_v26  ;;  %v1496_v49 = vld [vmem:[#allocation7 + $0x164] sm:$0xf0] }
  0x1f   :  { %613 = vmatpush.bf16.msrb.mxu0 %v1133_v30  ;;  %v1325_v44 = vor.u32 %v1514_v41, %v1324_v40  ;;  %v1462_v45 = vld [vmem:[#allocation7 + $0x54] sm:$0xf0]  ;;  %v1180_v46 = vld [vmem:[#allocation7 + $0xd0] sm:$0xf]  ;;  %1071 = vmatmul.msk.bf16.vlgmr.msra.gmra.mxu1 %vm159_vm0, %v100_v26  ;;  %v1316_v50 = vld [vmem:[#allocation7 + $0x1e0] sm:$0xf]  ;;  %v1253_v51 = vor.u32 %v1496_v49, %v1252_v48 }
  0x20   :  { %626 = vmatpush.bf16.msrb.mxu1 %v1197_v31  ;;  %v1478_v47 = vld [vmem:[#allocation7 + $0xd4] sm:$0xf0]  ;;  %1072 = vmatmul.msk.bf16.vlgmr.msra.gmra.mxu2 %vm159_vm0, %v100_v26  ;;  %v1512_v52 = vld [vmem:[#allocation7 + $0x1e4] sm:$0xf0]  ;;  %v1117_v53 = vor.u32 %v1462_v45, %v1116_v42  ;;  %v1108_v55 = vld [vmem:[#allocation7 + $0x40] sm:$0xf] }
  0x21   :  { %1073 = vmatmul.msk.bf16.vlgmr.msra.gmra.mxu3 %vm159_vm0, %v100_v26  ;;  %639 = vmatpush.bf16.msrb.mxu2 %v1261_v39  ;;  %v1317_v54 = vor.u32 %v1512_v52, %v1316_v50  ;;  %v1460_v56 = vld [vmem:[#allocation7 + $0x44] sm:$0xf0]  ;;  %v1244_v57 = vld [vmem:[#allocation7 + $0x150] sm:$0xf]  ;;  %v1181_v58 = vor.u32 %v1478_v47, %v1180_v46  ;;  %v1494_v59 = vld [vmem:[#allocation7 + $0x154] sm:$0xf0] }
  0x22   :  { %652 = vmatpush.bf16.msrb.mxu3 %v1325_v44  ;;  %v1308_v60 = vld [vmem:[#allocation7 + $0x1d0] sm:$0xf]  ;;  %v1510_v61 = vld [vmem:[#allocation7 + $0x1d4] sm:$0xf0]  ;;  %v1172_v62 = vld [vmem:[#allocation7 + $0xc0] sm:$0xf]  ;;  %v1245_v0 = vor.u32 %v1494_v59, %v1244_v57  ;;  %v1109_v1 = vor.u32 %v1460_v56, %v1108_v55 }
  0x23   :  { %614 = vmatpush.bf16.msrb.mxu0 %v1125_v38  ;;  %v1476_v63 = vld [vmem:[#allocation7 + $0xc4] sm:$0xf0]  ;;  %v1309_v2 = vor.u32 %v1510_v61, %v1308_v60  ;;  %v1100_v3 = vld [vmem:[#allocation7 + $0x30] sm:$0xf]  ;;  %v1236_v4 = vld [vmem:[#allocation7 + $0x140] sm:$0xf] }
  0x24   :  { %627 = vmatpush.bf16.msrb.mxu1 %v1189_v43  ;;  %v1492_v5 = vld [vmem:[#allocation7 + $0x144] sm:$0xf0]  ;;  %v1173_v6 = vor.u32 %v1476_v63, %v1172_v62  ;;  %v1458_v7 = vld [vmem:[#allocation7 + $0x34] sm:$0xf0]  ;;  %v1300_v8 = vld [vmem:[#allocation7 + $0x1c0] sm:$0xf] }
  0x25   :  { %640 = vmatpush.bf16.msrb.mxu2 %v1253_v51  ;;  %v1508_v9 = vld [vmem:[#allocation7 + $0x1c4] sm:$0xf0]  ;;  %v1164_v10 = vld [vmem:[#allocation7 + $0xb0] sm:$0xf]  ;;  %v1474_v11 = vld [vmem:[#allocation7 + $0xb4] sm:$0xf0]  ;;  %v1237_v12 = vor.u32 %v1492_v5, %v1236_v4  ;;  %v1101_v13 = vor.u32 %v1458_v7, %v1100_v3 }
  0x26   :  { %653 = vmatpush.bf16.msrb.mxu3 %v1317_v54  ;;  %v1301_v14 = vor.u32 %v1508_v9, %v1300_v8  ;;  %v1092_v15 = vld [vmem:[#allocation7 + $0x20] sm:$0xf]  ;;  %v1228_v16 = vld [vmem:[#allocation7 + $0x130] sm:$0xf]  ;;  %v1490_v17 = vld [vmem:[#allocation7 + $0x134] sm:$0xf0]  ;;  %v1165_v18 = vor.u32 %v1474_v11, %v1164_v10 }
  0x27   :  { %615 = vmatpush.bf16.msrb.mxu0 %v1117_v53  ;;  %v1456_v19 = vld [vmem:[#allocation7 + $0x24] sm:$0xf0]  ;;  %v1292_v20 = vld [vmem:[#allocation7 + $0x1b0] sm:$0xf]  ;;  %v1506_v21 = vld [vmem:[#allocation7 + $0x1b4] sm:$0xf0]  ;;  %v1229_v24 = vor.u32 %v1490_v17, %v1228_v16 }
  0x28   :  { %628 = vmatpush.bf16.msrb.mxu1 %v1181_v58  ;;  %v1156_v22 = vld [vmem:[#allocation7 + $0xa0] sm:$0xf]  ;;  %v1472_v23 = vld [vmem:[#allocation7 + $0xa4] sm:$0xf0]  ;;  %v1093_v25 = vor.u32 %v1456_v19, %v1092_v15  ;;  %v1293_v26 = vor.u32 %v1506_v21, %v1292_v20  ;;  %v1084_v27 = vld [vmem:[#allocation7 + $0x10] sm:$0xf] }
  0x29   :  { %641 = vmatpush.bf16.msrb.mxu2 %v1245_v0  ;;  %v1220_v28 = vld [vmem:[#allocation7 + $0x120] sm:$0xf]  ;;  %v1488_v29 = vld [vmem:[#allocation7 + $0x124] sm:$0xf0]  ;;  %v1157_v30 = vor.u32 %v1472_v23, %v1156_v22  ;;  %v1454_v31 = vld [vmem:[#allocation7 + $0x14] sm:$0xf0] }
  0x2a   :  { %654 = vmatpush.bf16.msrb.mxu3 %v1309_v2  ;;  %v1284_v32 = vld [vmem:[#allocation7 + $0x1a0] sm:$0xf]  ;;  %v1504_v33 = vld [vmem:[#allocation7 + $0x1a4] sm:$0xf0]  ;;  %v1148_v34 = vld [vmem:[#allocation7 + $0x90] sm:$0xf]  ;;  %v1221_v36 = vor.u32 %v1488_v29, %v1220_v28  ;;  %v1085_v39 = vor.u32 %v1454_v31, %v1084_v27 }
  0x2b   :  { %616 = vmatpush.bf16.msrb.mxu0 %v1109_v1  ;;  %v1470_v35 = vld [vmem:[#allocation7 + $0x94] sm:$0xf0]  ;;  %v1076_v37 = vld [vmem:[#allocation7] sm:$0xf]  ;;  %v1452_v38 = vld [vmem:[#allocation7 + $0x4] sm:$0xf0]  ;;  %v1285_v40 = vor.u32 %v1504_v33, %v1284_v32 }
  0x2c   :  { %629 = vmatpush.bf16.msrb.mxu1 %v1173_v6  ;;  %v1140_v41 = vld [vmem:[#allocation7 + $0x80] sm:$0xf]  ;;  %v1468_v42 = vld [vmem:[#allocation7 + $0x84] sm:$0xf0]  ;;  %v1212_v43 = vld [vmem:[#allocation7 + $0x110] sm:$0xf]  ;;  %v1149_v45 = vor.u32 %v1470_v35, %v1148_v34  ;;  %v1077_v53 = vor.u32 %v1452_v38, %v1076_v37 }
  0x2d   :  { %642 = vmatpush.bf16.msrb.mxu2 %v1237_v12  ;;  %v1486_v44 = vld [vmem:[#allocation7 + $0x114] sm:$0xf0]  ;;  %v1465_v46 = vld [vmem:[#allocation7 + $0x74] sm:$0xf]  ;;  %v1276_v47 = vld [vmem:[#allocation7 + $0x190] sm:$0xf]  ;;  %v1141_v59 = vor.u32 %v1468_v42, %v1140_v41 }
  0x2e   :  { %655 = vmatpush.bf16.msrb.mxu3 %v1301_v14  ;;  %v1502_v48 = vld [vmem:[#allocation7 + $0x194] sm:$0xf0]  ;;  %v1134_v49 = vld [vmem:[#allocation7 + $0x78] sm:$0xf0]  ;;  %v1481_v50 = vld [vmem:[#allocation7 + $0xf4] sm:$0xf]  ;;  %v1213_v52 = vor.u32 %v1486_v44, %v1212_v43 }
  0x2f   :  { %617 = vmatpush.bf16.msrb.mxu0 %v1101_v13  ;;  %v1198_v51 = vld [vmem:[#allocation7 + $0xf8] sm:$0xf0]  ;;  %v1277_v54 = vor.u32 %v1502_v48, %v1276_v47  ;;  %v1463_v55 = vld [vmem:[#allocation7 + $0x64] sm:$0xf]  ;;  %v1204_v56 = vld [vmem:[#allocation7 + $0x100] sm:$0xf]  ;;  %v1137_v60 = vor.u32 %v1465_v46, %v1134_v49 }
  0x30   :  { %630 = vmatpush.bf16.msrb.mxu1 %v1165_v18  ;;  %v1484_v57 = vld [vmem:[#allocation7 + $0x104] sm:$0xf0]  ;;  %v1268_v58 = vld [vmem:[#allocation7 + $0x180] sm:$0xf]  ;;  %v1497_v62 = vld [vmem:[#allocation7 + $0x174] sm:$0xf]  ;;  %v1201_v0 = vor.u32 %v1481_v50, %v1198_v51 }
  0x31   :  { %643 = vmatpush.bf16.msrb.mxu2 %v1229_v24  ;;  %v1500_v61 = vld [vmem:[#allocation7 + $0x184] sm:$0xf0]  ;;  %v1262_v63 = vld [vmem:[#allocation7 + $0x178] sm:$0xf0]  ;;  %v1126_v1 = vld [vmem:[#allocation7 + $0x68] sm:$0xf0]  ;;  %v1205_v6 = vor.u32 %v1484_v57, %v1204_v56 }
  0x32   :  { %656 = vmatpush.bf16.msrb.mxu3 %v1293_v26  ;;  %v1513_v2 = vld [vmem:[#allocation7 + $0x1f4] sm:$0xf]  ;;  %v1326_v3 = vld [vmem:[#allocation7 + $0x1f8] sm:$0xf0]  ;;  %v1479_v4 = vld [vmem:[#allocation7 + $0xe4] sm:$0xf]  ;;  %v1269_v7 = vor.u32 %v1500_v61, %v1268_v58  ;;  %v1265_v8 = vor.u32 %v1497_v62, %v1262_v63  ;;  %v1129_v9 = vor.u32 %v1463_v55, %v1126_v1 }
  0x33   :  { %618 = vmatpush.bf16.msrb.mxu0 %v1093_v25  ;;  %v1190_v5 = vld [vmem:[#allocation7 + $0xe8] sm:$0xf0]  ;;  %v1329_v10 = vor.u32 %v1513_v2, %v1326_v3  ;;  %v1461_v12 = vld [vmem:[#allocation7 + $0x54] sm:$0xf]  ;;  %v1118_v13 = vld [vmem:[#allocation7 + $0x58] sm:$0xf0] }
  0x34   :  { %631 = vmatpush.bf16.msrb.mxu1 %v1157_v30  ;;  %v1193_v11 = vor.u32 %v1479_v4, %v1190_v5  ;;  %v1477_v14 = vld [vmem:[#allocation7 + $0xd4] sm:$0xf]  ;;  %v1121_v15 = vor.u32 %v1461_v12, %v1118_v13  ;;  %v1182_v16 = vld [vmem:[#allocation7 + $0xd8] sm:$0xf0]  ;;  %v1495_v18 = vld [vmem:[#allocation7 + $0x164] sm:$0xf] }
  0x35   :  { %644 = vmatpush.bf16.msrb.mxu2 %v1221_v36  ;;  %v1185_v17 = vor.u32 %v1477_v14, %v1182_v16  ;;  %v1254_v19 = vld [vmem:[#allocation7 + $0x168] sm:$0xf0]  ;;  %v1511_v21 = vld [vmem:[#allocation7 + $0x1e4] sm:$0xf]  ;;  %v1493_v30 = vld [vmem:[#allocation7 + $0x154] sm:$0xf] }
  0x36   :  { %657 = vmatpush.bf16.msrb.mxu3 %v1285_v40  ;;  %v1257_v20 = vor.u32 %v1495_v18, %v1254_v19  ;;  %v1318_v22 = vld [vmem:[#allocation7 + $0x1e8] sm:$0xf0]  ;;  %v1459_v24 = vld [vmem:[#allocation7 + $0x44] sm:$0xf]  ;;  %v1246_v31 = vld [vmem:[#allocation7 + $0x158] sm:$0xf0] }
  0x37   :  { %619 = vmatpush.bf16.msrb.mxu0 %v1085_v39  ;;  %v1321_v23 = vor.u32 %v1511_v21, %v1318_v22  ;;  %v1110_v25 = vld [vmem:[#allocation7 + $0x48] sm:$0xf0]  ;;  %v1475_v26 = vld [vmem:[#allocation7 + $0xc4] sm:$0xf]  ;;  %v1509_v32 = vld [vmem:[#allocation7 + $0x1d4] sm:$0xf]  ;;  %v1249_v33 = vor.u32 %v1493_v30, %v1246_v31 }
  0x38   :  { %632 = vmatpush.bf16.msrb.mxu1 %v1149_v45  ;;  %v1113_v27 = vor.u32 %v1459_v24, %v1110_v25  ;;  %v1174_v28 = vld [vmem:[#allocation7 + $0xc8] sm:$0xf0]  ;;  %v1310_v34 = vld [vmem:[#allocation7 + $0x1d8] sm:$0xf0]  ;;  %v1457_v36 = vld [vmem:[#allocation7 + $0x34] sm:$0xf] }
  0x39   :  { %645 = vmatpush.bf16.msrb.mxu2 %v1213_v52  ;;  %v1177_v29 = vor.u32 %v1475_v26, %v1174_v28  ;;  %v1313_v35 = vor.u32 %v1509_v32, %v1310_v34  ;;  %v1102_v37 = vld [vmem:[#allocation7 + $0x38] sm:$0xf0]  ;;  %v1473_v39 = vld [vmem:[#allocation7 + $0xb4] sm:$0xf]  ;;  %v1491_v42 = vld [vmem:[#allocation7 + $0x144] sm:$0xf] }
  0x3a   :  { %658 = vmatpush.bf16.msrb.mxu3 %v1277_v54  ;;  %v1105_v38 = vor.u32 %v1457_v36, %v1102_v37  ;;  %v1166_v40 = vld [vmem:[#allocation7 + $0xb8] sm:$0xf0]  ;;  %v1238_v43 = vld [vmem:[#allocation7 + $0x148] sm:$0xf0]  ;;  %v1507_v44 = vld [vmem:[#allocation7 + $0x1c4] sm:$0xf] }
  0x3b   :  { %620 = vmatpush.bf16.msrb.mxu0 %v1077_v53  ;;  %v1169_v41 = vor.u32 %v1473_v39, %v1166_v40  ;;  %v1241_v45 = vor.u32 %v1491_v42, %v1238_v43  ;;  %v1302_v46 = vld [vmem:[#allocation7 + $0x1c8] sm:$0xf0]  ;;  %v1455_v48 = vld [vmem:[#allocation7 + $0x24] sm:$0xf]  ;;  %v1489_v54 = vld [vmem:[#allocation7 + $0x134] sm:$0xf] }
  0x3c   :  { %633 = vmatpush.bf16.msrb.mxu1 %v1141_v59  ;;  %v1305_v47 = vor.u32 %v1507_v44, %v1302_v46  ;;  %v1094_v49 = vld [vmem:[#allocation7 + $0x28] sm:$0xf0]  ;;  %v1471_v50 = vld [vmem:[#allocation7 + $0xa4] sm:$0xf]  ;;  %v1230_v55 = vld [vmem:[#allocation7 + $0x138] sm:$0xf0] }
  0x3d   :  { %646 = vmatpush.bf16.msrb.mxu2 %v1205_v6  ;;  %v1097_v51 = vor.u32 %v1455_v48, %v1094_v49  ;;  %v1158_v52 = vld [vmem:[#allocation7 + $0xa8] sm:$0xf0]  ;;  %v1505_v56 = vld [vmem:[#allocation7 + $0x1b4] sm:$0xf]  ;;  %v1233_v57 = vor.u32 %v1489_v54, %v1230_v55  ;;  %v1294_v58 = vld [vmem:[#allocation7 + $0x1b8] sm:$0xf0] }
  0x3e   :  { %659 = vmatpush.bf16.msrb.mxu3 %v1269_v7  ;;  %v1161_v53 = vor.u32 %v1471_v50, %v1158_v52  ;;  %v1297_v59 = vor.u32 %v1505_v56, %v1294_v58  ;;  %v1086_v61 = vld [vmem:[#allocation7 + $0x18] sm:$0xf0]  ;;  %v1469_v62 = vld [vmem:[#allocation7 + $0x94] sm:$0xf]  ;;  %v1487_v1 = vld [vmem:[#allocation7 + $0x124] sm:$0xf] }
  0x3f   :  { %665 = vmatpush.bf16.msra.mxu0 %v1137_v60  ;;  %v1453_v60 = vld [vmem:[#allocation7 + $0x14] sm:$0xf]  ;;  %v1222_v2 = vld [vmem:[#allocation7 + $0x128] sm:$0xf0]  ;;  %v1503_v5 = vld [vmem:[#allocation7 + $0x1a4] sm:$0xf] }
  0x40   :  { %678 = vmatpush.bf16.msra.mxu1 %v1201_v0  ;;  %v1089_v63 = vor.u32 %v1453_v60, %v1086_v61  ;;  %v1150_v0 = vld [vmem:[#allocation7 + $0x98] sm:$0xf0]  ;;  %v1225_v4 = vor.u32 %v1487_v1, %v1222_v2  ;;  %v1286_v6 = vld [vmem:[#allocation7 + $0x1a8] sm:$0xf0]  ;;  %v1451_v7 = vld [vmem:[#allocation7 + $0x4] sm:$0xf] }
  0x41   :  { %691 = vmatpush.bf16.msra.mxu2 %v1265_v8  ;;  %v1153_v3 = vor.u32 %v1469_v62, %v1150_v0  ;;  %v1289_v8 = vor.u32 %v1503_v5, %v1286_v6  ;;  %v1485_v14 = vld [vmem:[#allocation7 + $0x114] sm:$0xf]  ;;  %v1278_v18 = vld [vmem:[#allocation7 + $0x198] sm:$0xf0]  ;;  %v1206_v21 = vld [vmem:[#allocation7 + $0x108] sm:$0xf0] }
  0x42   :  { %704 = vmatpush.bf16.msra.mxu3 %v1329_v10  ;;  %v1467_v10 = vld [vmem:[#allocation7 + $0x84] sm:$0xf]  ;;  %v1501_v16 = vld [vmem:[#allocation7 + $0x194] sm:$0xf]  ;;  %v1270_v24 = vld [vmem:[#allocation7 + $0x188] sm:$0xf0] }
  0x43   :  { %666 = vmatpush.bf16.msra.mxu0 %v1129_v9  ;;  %v1078_v9 = vld [vmem:[#allocation7 + $0x8] sm:$0xf0]  ;;  %v1281_v19 = vor.u32 %v1501_v16, %v1278_v18  ;;  %v1499_v22 = vld [vmem:[#allocation7 + $0x184] sm:$0xf]  ;;  %v109_v25 = vld [vmem:[#allocation5] sm:$0xf] }
  0x44   :  { %679 = vmatpush.bf16.msra.mxu1 %v1193_v11  ;;  %v1142_v11 = vld [vmem:[#allocation7 + $0x88] sm:$0xf0]  ;;  %v1081_v12 = vor.u32 %v1451_v7, %v1078_v9  ;;  %v1273_v26 = vor.u32 %v1499_v22, %v1270_v24  ;;  %v112_v28 = vperm.slane %v109_v25, 1  ;;  %v1522_v36 = vld [vmem:[#allocation8 + $0x38] sm:$0xff]  ;;  %v1521_v44 = vld [vmem:[#allocation8 + $0x30] sm:$0xff]  ;;  %vm1000_vm1 = vcmask 523264  }
  0x45   :  { %692 = vmatpush.bf16.msra.mxu2 %v1257_v20  ;;  %v1145_v13 = vor.u32 %v1467_v10, %v1142_v11  ;;  %v1483_v20 = vld [vmem:[#allocation7 + $0x104] sm:$0xf]  ;;  %v1520_v50 = vld [vmem:[#allocation8 + $0x28] sm:$0xff]  ;;  %v1530_v55 = vld [vmem:[#allocation8 + $0x78] sm:$0xff] }
  0x46   :  { %705 = vmatpush.bf16.msra.mxu3 %v1321_v23  ;;  %v1209_v23 = vor.u32 %v1483_v20, %v1206_v21  ;;  %v1519_v54 = vld [vmem:[#allocation8 + $0x20] sm:$0xff]  ;;  %v1518_v56 = vld [vmem:[#allocation8 + $0x18] sm:$0xff]  ;;  %v1529_v58 = vld [vmem:[#allocation8 + $0x70] sm:$0xff] }
  0x47   :  { %667 = vmatpush.bf16.msra.mxu0 %v1121_v15  ;;  %v1214_v15 = vld [vmem:[#allocation7 + $0x118] sm:$0xf0]  ;;  %v1528_v60 = vld [vmem:[#allocation8 + $0x68] sm:$0xff]  ;;  %v1515_v61 = vld [vmem:[#allocation8] sm:$0xff] }
  0x48   :  { %680 = vmatpush.bf16.msra.mxu1 %v1185_v17  ;;  %v1217_v17 = vor.u32 %v1485_v14, %v1214_v15  ;;  %v1527_v62 = vld [vmem:[#allocation8 + $0x60] sm:$0xff]  ;;  %v1525_v0 = vld [vmem:[#allocation8 + $0x50] sm:$0xff]  ;;  %v1524_v1 = vld [vmem:[#allocation8 + $0x48] sm:$0xff] }
  0x49   :  { %693 = vmatpush.bf16.msra.mxu2 %v1249_v33  ;;  %v287_v2 = vld [vmem:[%s1873_s4] sm:$0x3]  ;;  %v1523_v6 = vld [vmem:[#allocation8 + $0x40] sm:$0xff] }
  0x4a   :  { %706 = vmatpush.bf16.msra.mxu3 %v1313_v35  ;;  %v113_v35 = vperm.slane %v109_v25, 2  ;;  %v289_v5 = vperm.slane %v287_v2, 0  ;;  %v1537_v10 = vld [vmem:[%s1876_s7 + $0x30] sm:$0xff]  ;;  %v290_v21 = vperm.slane %v287_v2, 1 }
  0x4b   :  { %668 = vmatpush.bf16.msra.mxu0 %v1113_v27  ;;  %v111_v27 = vperm.slane %v109_v25, 0 }
  0x4c   :  { %681 = vmatpush.bf16.msra.mxu1 %v1177_v29 }
  0x4d   :  { %694 = vmatpush.bf16.msra.mxu2 %v1241_v45 }
  0x4e   :  { %707 = vmatpush.bf16.msra.mxu3 %v1305_v47 }
  0x4f   :  { %669 = vmatpush.bf16.msra.mxu0 %v1105_v38  ;;  %v114_v38 = vperm.slane %v109_v25, 3 }
  0x50   :  { %682 = vmatpush.bf16.msra.mxu1 %v1169_v41 }
  0x51   :  { %695 = vmatpush.bf16.msra.mxu2 %v1233_v57  ;;  %v1517_v57 = vld [vmem:[#allocation8 + $0x10] sm:$0xff] }
  0x52   :  { %708 = vmatpush.bf16.msra.mxu3 %v1297_v59  ;;  %v1516_v59 = vld [vmem:[#allocation8 + $0x8] sm:$0xff] }
  0x53   :  { %670 = vmatpush.bf16.msra.mxu0 %v1097_v51 }
  0x54   :  { %683 = vmatpush.bf16.msra.mxu1 %v1161_v53 }
  0x55   :  { %696 = vmatpush.bf16.msra.mxu2 %v1225_v4 }
  0x56   :  { %709 = vmatpush.bf16.msra.mxu3 %v1289_v8  ;;  %v1538_v8 = vld [vmem:[%s1876_s7 + $0x38] sm:$0xff] }
  0x57   :  { %671 = vmatpush.bf16.msra.mxu0 %v1089_v63  ;;  %v1526_v63 = vld [vmem:[#allocation8 + $0x58] sm:$0xff] }
  0x58   :  { %684 = vmatpush.bf16.msra.mxu1 %v1153_v3 }
  0x59   :  { %697 = vmatpush.bf16.msra.mxu2 %v1217_v17 }
  0x5a   :  { %710 = vmatpush.bf16.msra.mxu3 %v1281_v19 }
  0x5b   :  { %672 = vmatpush.bf16.msra.mxu0 %v1081_v12 }
  0x5c   :  { %685 = vmatpush.bf16.msra.mxu1 %v1145_v13 }
  0x5d   :  { %698 = vmatpush.bf16.msra.mxu2 %v1209_v23 }
  0x5e   :  { %711 = vmatpush.bf16.msra.mxu3 %v1273_v26 }
  0x9b   :  { %v172_v29 = vpop.f32.mrf.mxu0 }
  0x9c   :  { %v173_v30 = vadd.f32 %v172_v29, %v111_v27  ;;  %v185_v31 = vpop.f32.mrf.mxu1 }
  0x9d   :  { %v186_v32 = vadd.f32 %v185_v31, %v112_v28 }
  0x9e   :  { %v215_v33 = vmax.f32 %v173_v30, 0.0 }
  0x9f   :  { %v216_v34 = vmax.f32 %v186_v32, 0.0 }
  0xa0   :  { %v219_v37 = vpack.c.bf16 %v215_v33, %v215_v33 }
  0xa1   :  { %v220_v39 = vpack.c.bf16 %v216_v34, %v216_v34 }
  0xa2   :  { %621 = vmatmul.bf16.vlgmr.msrb.gmra.mxu0 %v219_v37 }
  0xa3   :  { %v198_v40 = vpop.f32.mrf.mxu2  ;;  %634 = vmatmul.bf16.vlgmr.msrb.gmra.mxu1 %v220_v39  ;;  %v174_v43 = vpop.f32.mrf.mxu0  ;;  %853 = vmatpush.bf16.msrb.mxu0 %v1522_v36  ;;  %v1536_v36 = vld [vmem:[%s1876_s7 + $0x28] sm:$0xff] }
  0xa4   :  { %v199_v41 = vadd.f32 %v198_v40, %v113_v35  ;;  %v211_v42 = vpop.f32.mrf.mxu3  ;;  %v187_v46 = vpop.f32.mrf.mxu1  ;;  %866 = vmatpush.bf16.msrb.mxu1 %v1530_v55  ;;  %v1532_v40 = vld [vmem:[%s1876_s7 + $0x8] sm:$0xff]  ;;  %v1541_v43 = vld [vmem:[%s1878_s9 + $0x10] sm:$0xff]  ;;  %v1553_v55 = vld [vmem:[%s1877_s8] ss:$0 sm:$0xff]  ;;  %s1026_s8 = sshll.u32 %s1880_s11, 4  ;;  %s1027_s8 = int_to_ptr.hbm [resolvable:$true] %s1026_s8 }
  0xa5   :  { %v212_v45 = vadd.f32 %v211_v42, %v114_v38  ;;  %v1534_v38 = vld [vmem:[%s1876_s7 + $0x18] sm:$0xff] }
  0xa6   :  { %v217_v47 = vmax.f32 %v199_v41, 0.0  ;;  %v1531_v41 = vld [vmem:[%s1876_s7] sm:$0xff]  ;;  %v1542_v42 = vld [vmem:[%s1878_s9 + $0x18] sm:$0xff] }
  0xa7   :  { %v218_v48 = vmax.f32 %v212_v45, 0.0  ;;  %854 = vmatpush.bf16.msrb.mxu0 %v1521_v44  ;;  %v1540_v44 = vld [vmem:[%s1878_s9 + $0x8] sm:$0xff] }
  0xa8   :  { %v221_v49 = vpack.c.bf16 %v217_v47, %v217_v47  ;;  %867 = vmatpush.bf16.msrb.mxu1 %v1529_v58  ;;  %v1552_v47 = vld [vmem:[%s1875_s6] ss:$0 sm:$0xff] }
  0xa9   :  { %v222_v51 = vpack.c.bf16 %v218_v48, %v218_v48 }
  0xaa   :  { %647 = vmatmul.bf16.vlgmr.msrb.gmra.mxu2 %v221_v49 }
  0xab   :  { %660 = vmatmul.bf16.vlgmr.msrb.gmra.mxu3 %v222_v51  ;;  %v200_v52 = vpop.f32.mrf.mxu2  ;;  %855 = vmatpush.bf16.msrb.mxu0 %v1520_v50 }
  0xac   :  { %v213_v53 = vpop.f32.mrf.mxu3  ;;  %868 = vmatpush.bf16.msrb.mxu1 %v1528_v60  ;;  %949 = vmatpush.bf16.msrb.mxu2 %v1538_v8 }
  0xad   :  { %1008 = vmatpush.bf16.msrb.mxu3 %v1542_v42 }
  0xaf   :  { %856 = vmatpush.bf16.msrb.mxu0 %v1519_v54  ;;  %v1539_v54 = vld [vmem:[%s1878_s9] sm:$0xff]  ;;  %s1693_s9 = smov [#allocation10]  }
  0xb0   :  { %869 = vmatpush.bf16.msrb.mxu1 %v1527_v62  ;;  %950 = vmatpush.bf16.msrb.mxu2 %v1537_v10  ;;  %s1024_s30 = sshll.u32 %s1693_s9, 4  ;;  %s1025_s30 = int_to_ptr.vmem [resolvable:$true] %s1024_s30 }
  0xb1   :  { %1009 = vmatpush.bf16.msrb.mxu3 %v1541_v43 }
  0xb2   :  { %673 = vmatmul.bf16.vlgmr.msra.gmra.mxu0 %v219_v37  ;;  %v1535_v37 = vld [vmem:[%s1876_s7 + $0x20] sm:$0xff] }
  0xb3   :  { %686 = vmatmul.bf16.vlgmr.msra.gmra.mxu1 %v220_v39  ;;  %857 = vmatpush.bf16.msrb.mxu0 %v1518_v56  ;;  %v1533_v39 = vld [vmem:[%s1876_s7 + $0x10] sm:$0xff] }
  0xb4   :  { %870 = vmatpush.bf16.msrb.mxu1 %v1526_v63  ;;  %951 = vmatpush.bf16.msrb.mxu2 %v1536_v36 }
  0xb5   :  { %1010 = vmatpush.bf16.msrb.mxu3 %v1540_v44 }
  0xb7   :  { %858 = vmatpush.bf16.msrb.mxu0 %v1517_v57 }
  0xb8   :  { %871 = vmatpush.bf16.msrb.mxu1 %v1525_v0  ;;  %952 = vmatpush.bf16.msrb.mxu2 %v1535_v37 }
  0xb9   :  { %1011 = vmatpush.bf16.msrb.mxu3 %v1539_v54 }
  0xba   :  { %699 = vmatmul.bf16.vlgmr.msra.gmra.mxu2 %v221_v49 }
  0xbb   :  { %712 = vmatmul.bf16.vlgmr.msra.gmra.mxu3 %v222_v51  ;;  %859 = vmatpush.bf16.msrb.mxu0 %v1516_v59 }
  0xbc   :  { %872 = vmatpush.bf16.msrb.mxu1 %v1524_v1  ;;  %953 = vmatpush.bf16.msrb.mxu2 %v1534_v38 }
  0xbf   :  { %860 = vmatpush.bf16.msrb.mxu0 %v1515_v61  ;;  %v1554_v61 = vld [vmem:[%s1879_s10] ss:$0 sm:$0xff] }
  0xc0   :  { %873 = vmatpush.bf16.msrb.mxu1 %v1523_v6  ;;  %954 = vmatpush.bf16.msrb.mxu2 %v1533_v39 }
  0xc4   :  { %955 = vmatpush.bf16.msrb.mxu2 %v1532_v40 }
  0xc8   :  { %956 = vmatpush.bf16.msrb.mxu2 %v1531_v41 }
 0x11f   :  { %v622_v3 = vpop.f32.mrf.mxu0 }
 0x120   :  { %v635_v4 = vpop.f32.mrf.mxu1  ;;  %v623_v7 = vadd.f32 %v622_v3, %v289_v5 }
 0x122   :  { %v636_v12 = vadd.f32 %v635_v4, %v623_v7 }
 0x127   :  { %v624_v9 = vpop.f32.mrf.mxu0 }
 0x128   :  { %v637_v11 = vpop.f32.mrf.mxu1 }
 0x12d   :  { %v648_v13 = vpop.f32.mrf.mxu2 }
 0x12e   :  { %v649_v14 = vadd.f32 %v648_v13, %v636_v12  ;;  %v661_v15 = vpop.f32.mrf.mxu3 }
 0x12f   :  { %v674_v17 = vpop.f32.mrf.mxu0 }
 0x130   :  { %v662_v16 = vadd.f32 %v661_v15, %v649_v14  ;;  %v687_v18 = vpop.f32.mrf.mxu1  ;;  %v675_v24 = vadd.f32 %v674_v17, %v290_v21 }
 0x132   :  { %v717_v19 = vmax.f32 %v662_v16, 0.0  ;;  %v688_v27 = vadd.f32 %v687_v18, %v675_v24 }
 0x134   :  { %v719_v20 = vpack.c.bf16 %v717_v19, %v717_v19 }
 0x135   :  { %v650_v22 = vpop.f32.mrf.mxu2 }
 0x136   :  { %v663_v23 = vpop.f32.mrf.mxu3  ;;  %861 = vmatmul.bf16.vlgmr.msrb.gmra.mxu0 %v719_v20 }
 0x137   :  { %v676_v25 = vpop.f32.mrf.mxu0 }
 0x138   :  { %v689_v26 = vpop.f32.mrf.mxu1 }
 0x13d   :  { %v700_v28 = vpop.f32.mrf.mxu2 }
 0x13e   :  { %v701_v29 = vadd.f32 %v700_v28, %v688_v27  ;;  %v713_v30 = vpop.f32.mrf.mxu3 }
 0x140   :  { %v714_v31 = vadd.f32 %v713_v30, %v701_v29 }
 0x142   :  { %v718_v32 = vmax.f32 %v714_v31, 0.0 }
 0x144   :  { %v720_v33 = vpack.c.bf16 %v718_v32, %v718_v32 }
 0x145   :  { %v702_v34 = vpop.f32.mrf.mxu2 }
 0x146   :  { %v715_v35 = vpop.f32.mrf.mxu3  ;;  %874 = vmatmul.bf16.vlgmr.msrb.gmra.mxu1 %v720_v33 }
 0x1b3   :  { %v862_v45 = vpop.f32.mrf.mxu0 }
 0x1b4   :  { %v863_v48 = vadd.f32 %v1552_v47, %v862_v45 }
 0x1bb   :  { %v864_v46 = vpop.f32.mrf.mxu0 }
 0x1c3   :  { %v875_v49 = vpop.f32.mrf.mxu1 }
 0x1c4   :  { %v876_v50 = vadd.f32 %v875_v49, %v863_v48 }
 0x1c6   :  { %v879_v51 = vmax.f32 %v876_v50, 0.0 }
 0x1c8   :  { %v880_v52 = vpack.c.bf16 %v879_v51, %v879_v51 }
 0x1ca   :  { %957 = vmatmul.bf16.vlgmr.msrb.gmra.mxu2 %v880_v52 }
 0x1cb   :  { %v877_v53 = vpop.f32.mrf.mxu1 }
 0x24d   :  { %v958_v56 = vpop.f32.mrf.mxu2 }
 0x24e   :  { %v959_v57 = vadd.f32 %v1553_v55, %v958_v56 }
 0x250   :  { %v962_v58 = vmax.f32 %v959_v57, 0.0 }
 0x252   :  { %v963_v59 = vpack.c.bf16 %v962_v58, %v962_v58 }
 0x254   :  { %1442 = vmatmul.msk.bf16.vlgmr.msrb.gmra.mxu3 %vm1000_vm1, %v963_v59 }
 0x255   :  { %v960_v60 = vpop.f32.mrf.mxu2 }
 0x2d7   :  { %v1013_v62 = vpop.f32.mrf.mxu3 }
 0x2d8   :  { %v1014_v63 = vadd.f32 %v1554_v61, %v1013_v62 }
 0x2da   :  { %1555 = vtanh.f32 %v1014_v63 }
 0x2df   :  { %v1015_v0 = vpop.f32.mrf.mxu3 }
 0x2e0   :  { %v1556_v1 = vpop.eup %1555 }
 0x2e1   :  { %1018 = vst [vmem:[#allocation10] sm:$0xff] %v1556_v1 }
 0x2e2   :  { %1029 = dma.vmem_to_hbm [thread:$0]  %s1025_s30, 128, %s1027_s8, [#allocation4]  }
 0x2e3   :  { %1683 = dma.done.wait [#allocation4], 128  }
 0x2e4   :  { %1684 = vsyncadd [#allocation4], 4294967168 }
 0x2e5   :  { %1034 = vsyncpa [#allocation3], 1 }
 0x2e6   :  { %1035 = vsyncpa [#allocation6], 1 }
 0x2e7   :  { %1036 = vsyncpa [#allocation9], 1 }
 0x2e8   :  { %1037 = vsyncpa [#allocation4], 1 }

// kernel: tpu_custom_call.1
= control target key start
LH: loop header
LB: loop body
LE: loop exit
PB: predicated region body
PF: predicated region fallthrough
CT: control target
= control target key end

     0   :  { %16 = vsyncpa [#allocation3], 0  ;;  %s1869_s0 = inlined_call_operand.hbm [shape: f32[8,32], index: 0, kind: input, shape index: {}]   ;;  %s1870_s1 = inlined_call_operand.vmem [shape: bf16[32,512], index: 1, kind: input, shape index: {}]   ;;  %s1871_s2 = inlined_call_operand.hbm [shape: f32[1,512], index: 2, kind: input, shape index: {}]   ;;  %s1872_s3 = inlined_call_operand.hbm [shape: bf16[512,256], index: 3, kind: input, shape index: {}]   ;;  %s1873_s4 = inlined_call_operand.vmem [shape: f32[1,256], index: 4, kind: input, shape index: {}]   ;;  %s1874_s5 = inlined_call_operand.hbm [shape: bf16[256,128], index: 5, kind: input, shape index: {}]   ;;  %s1875_s6 = inlined_call_operand.vmem [shape: f32[1,128], index: 6, kind: input, shape index: {}]   ;;  %s1876_s7 = inlined_call_operand.vmem [shape: bf16[128,64], index: 7, kind: input, shape index: {}]   ;;  %s1877_s8 = inlined_call_operand.vmem [shape: f32[1,64], index: 8, kind: input, shape index: {}]   ;;  %s1878_s9 = inlined_call_operand.vmem [shape: bf16[64,128], index: 9, kind: input, shape index: {}]   ;;  %s1879_s10 = inlined_call_operand.vmem [shape: f32[1,128], index: 10, kind: input, shape index: {}]   ;;  %s1880_s11 = inlined_call_operand.hbm [shape: f32[8,128], index: 11, kind: output, shape index: {}]  }
   0x1   :  { %17 = vsyncpa [#allocation6], 0 }
   0x2   :  { %18 = vsyncpa [#allocation9], 0  ;;  %s38_s19 = sshll.u32 %s1871_s2, 4  ;;  %s39_s19 = int_to_ptr.hbm [resolvable:$true] %s38_s19 }
   0x3   :  { %19 = vsyncpa [#allocation4], 0  ;;  %s1685_s20 = smov [#allocation5]   ;;  %s25_s24 = sshll.u32 %s1869_s0, 4  ;;  %s26_s24 = int_to_ptr.hbm [resolvable:$true] %s25_s24 }
   0x4   :  { %s40_s21 = sshll.u32 %s1685_s20, 4  ;;  %s1686_s25 = smov [#allocation2]   ;;  %s41_s21 = int_to_ptr.vmem [resolvable:$true] %s40_s21 }
   0x5   :  { %43 = dma.hbm_to_vmem [thread:$0]  %s39_s19, 64, %s41_s21, [#allocation6]  }
   0x6   :  { %s27_s26 = sshll.u32 %s1686_s25, 4  ;;  %s48_s29 = sshll.u32 %s1872_s3, 4  ;;  %s28_s26 = int_to_ptr.vmem [resolvable:$true] %s27_s26  ;;  %s49_s29 = int_to_ptr.hbm [resolvable:$true] %s48_s29 }
   0x7   :  { %30 = dma.hbm_to_vmem [thread:$0]  %s26_s24, 128, %s28_s26, [#allocation3]  }
   0x8   :  { %s1687_s2 = smov [#allocation7]   ;;  %s63_s14 = sshll.u32 %s1874_s5, 4  ;;  %s64_s14 = int_to_ptr.hbm [resolvable:$true] %s63_s14 }
   0x9   :  { %s50_s30 = sshll.u32 %s1687_s2, 4  ;;  %s1688_s15 = smov 128   ;;  %s51_s30 = int_to_ptr.vmem [resolvable:$true] %s50_s30 }
   0xa   :  { %s1689_s0 = smov 8   ;;  %s1690_s16 = smov [#allocation8]  }
   0xb   :  { %56 = dma.hbm_to_vmem [thread:$0]  %s49_s29, 8192, %s51_s30, [#allocation6], %s1688_s15, %s1688_s15, %s1689_s0  }
   0xc   :  { %s65_s17 = sshll.u32 %s1690_s16, 4  ;;  %s1691_s18 = smov 64   ;;  %s66_s17 = int_to_ptr.vmem [resolvable:$true] %s65_s17 }
   0xd   :  { %s1692_s19 = smov 4  }
   0xe   :  { %71 = dma.hbm_to_vmem [thread:$0]  %s64_s14, 2048, %s66_s17, [#allocation9], %s1691_s18, %s1691_s18, %s1692_s19  }
   0xf   :  { %1677 = dma.done.wait [#allocation3], 128  }
  0x10   :  { %1678 = vsyncadd [#allocation3], 4294967168 }
  0x11   :  { %1679 = dma.done.wait [#allocation6], 8256  }
  0x12   :  { %1680 = vsyncadd [#allocation6], 4294959040 }
  0x13   :  { %1681 = dma.done.wait [#allocation9], 2048  }
  0x14   :  { %1682 = vsyncadd [#allocation9], 4294965248  ;;  %v1056_v0 = vld [vmem:[%s1870_s1 + $0x20] sm:$0xf]  ;;  %v1449_v1 = vld [vmem:[%s1870_s1 + $0x2c] sm:$0xf0] }
  0x15   :  { %v1447_v2 = vld [vmem:[%s1870_s1 + $0x24] sm:$0xf]  ;;  %v1057_v3 = vor.u32 %v1449_v1, %v1056_v0  ;;  %v1058_v4 = vld [vmem:[%s1870_s1 + $0x30] sm:$0xf0]  ;;  %v1064_v5 = vld [vmem:[%s1870_s1 + $0x28] sm:$0xf] }
  0x16   :  { %v1450_v6 = vld [vmem:[%s1870_s1 + $0x34] sm:$0xf0]  ;;  %v1061_v7 = vor.u32 %v1447_v2, %v1058_v4  ;;  %v1448_v9 = vld [vmem:[%s1870_s1 + $0x2c] sm:$0xf]  ;;  %v1066_v10 = vld [vmem:[%s1870_s1 + $0x38] sm:$0xf0] }
  0x17   :  { %v1065_v8 = vor.u32 %v1450_v6, %v1064_v5  ;;  %v1040_v11 = vld [vmem:[%s1870_s1] sm:$0xf]  ;;  %169 = vmatpush.bf16.msra.mxu0 %v1057_v3  ;;  %v1069_v12 = vor.u32 %v1448_v9, %v1066_v10  ;;  %v1445_v13 = vld [vmem:[%s1870_s1 + $0xc] sm:$0xf0]  ;;  %v1443_v14 = vld [vmem:[%s1870_s1 + $0x4] sm:$0xf] }
  0x18   :  { %v1042_v15 = vld [vmem:[%s1870_s1 + $0x10] sm:$0xf0]  ;;  %182 = vmatpush.bf16.msra.mxu1 %v1061_v7  ;;  %v1041_v16 = vor.u32 %v1445_v13, %v1040_v11  ;;  %v1048_v18 = vld [vmem:[%s1870_s1 + $0x8] sm:$0xf]  ;;  %v1446_v19 = vld [vmem:[%s1870_s1 + $0x14] sm:$0xf0] }
  0x19   :  { %195 = vmatpush.bf16.msra.mxu2 %v1065_v8  ;;  %v1045_v17 = vor.u32 %v1443_v14, %v1042_v15  ;;  %v1444_v20 = vld [vmem:[%s1870_s1 + $0xc] sm:$0xf]  ;;  %208 = vmatpush.bf16.msra.mxu3 %v1069_v12  ;;  %v1049_v21 = vor.u32 %v1446_v19, %v1048_v18  ;;  %v1050_v22 = vld [vmem:[%s1870_s1 + $0x18] sm:$0xf0]  ;;  %v99_v23 = vld [vmem:[#allocation2] sm:$0xff]  ;;  %vm159_vm0 = vcmask 261120  }
  0x1a   :  { %v1132_v24 = vld [vmem:[#allocation7 + $0x70] sm:$0xf]  ;;  %v1053_v25 = vor.u32 %v1444_v20, %v1050_v22  ;;  %v100_v26 = vpack.c.bf16 %v99_v23, %v99_v23  ;;  %v1466_v27 = vld [vmem:[#allocation7 + $0x74] sm:$0xf0]  ;;  %v1124_v32 = vld [vmem:[#allocation7 + $0x60] sm:$0xf] }
  0x1b   :  { %v1196_v28 = vld [vmem:[#allocation7 + $0xf0] sm:$0xf]  ;;  %v1482_v29 = vld [vmem:[#allocation7 + $0xf4] sm:$0xf0]  ;;  %170 = vmatpush.bf16.msra.mxu0 %v1041_v16  ;;  %v1133_v30 = vor.u32 %v1466_v27, %v1132_v24  ;;  %v1464_v33 = vld [vmem:[#allocation7 + $0x64] sm:$0xf0] }
  0x1c   :  { %v1197_v31 = vor.u32 %v1482_v29, %v1196_v28  ;;  %v1188_v34 = vld [vmem:[#allocation7 + $0xe0] sm:$0xf]  ;;  %183 = vmatpush.bf16.msra.mxu1 %v1045_v17  ;;  %v1480_v35 = vld [vmem:[#allocation7 + $0xe4] sm:$0xf0]  ;;  %v1260_v36 = vld [vmem:[#allocation7 + $0x170] sm:$0xf]  ;;  %v1125_v38 = vor.u32 %v1464_v33, %v1124_v32 }
  0x1d   :  { %196 = vmatpush.bf16.msra.mxu2 %v1049_v21  ;;  %v1498_v37 = vld [vmem:[#allocation7 + $0x174] sm:$0xf0]  ;;  %209 = vmatpush.bf16.msra.mxu3 %v1053_v25  ;;  %v1324_v40 = vld [vmem:[#allocation7 + $0x1f0] sm:$0xf]  ;;  %v1189_v43 = vor.u32 %v1480_v35, %v1188_v34  ;;  %v1252_v48 = vld [vmem:[#allocation7 + $0x160] sm:$0xf] }
  0x1e   :  { %v1261_v39 = vor.u32 %v1498_v37, %v1260_v36  ;;  %v1514_v41 = vld [vmem:[#allocation7 + $0x1f4] sm:$0xf0]  ;;  %v1116_v42 = vld [vmem:[#allocation7 + $0x50] sm:$0xf]  ;;  %1070 = vmatmul.msk.bf16.vlgmr.msra.gmra.mxu0 %vm159_vm0, %v100_v26  ;;  %v1496_v49 = vld [vmem:[#allocation7 + $0x164] sm:$0xf0] }
  0x1f   :  { %613 = vmatpush.bf16.msrb.mxu0 %v1133_v30  ;;  %v1325_v44 = vor.u32 %v1514_v41, %v1324_v40  ;;  %v1462_v45 = vld [vmem:[#allocation7 + $0x54] sm:$0xf0]  ;;  %v1180_v46 = vld [vmem:[#allocation7 + $0xd0] sm:$0xf]  ;;  %1071 = vmatmul.msk.bf16.vlgmr.msra.gmra.mxu1 %vm159_vm0, %v100_v26  ;;  %v1316_v50 = vld [vmem:[#allocation7 + $0x1e0] sm:$0xf]  ;;  %v1253_v51 = vor.u32 %v1496_v49, %v1252_v48 }
  0x20   :  { %626 = vmatpush.bf16.msrb.mxu1 %v1197_v31  ;;  %v1478_v47 = vld [vmem:[#allocation7 + $0xd4] sm:$0xf0]  ;;  %1072 = vmatmul.msk.bf16.vlgmr.msra.gmra.mxu2 %vm159_vm0, %v100_v26  ;;  %v1512_v52 = vld [vmem:[#allocation7 + $0x1e4] sm:$0xf0]  ;;  %v1117_v53 = vor.u32 %v1462_v45, %v1116_v42  ;;  %v1108_v55 = vld [vmem:[#allocation7 + $0x40] sm:$0xf] }
  0x21   :  { %1073 = vmatmul.msk.bf16.vlgmr.msra.gmra.mxu3 %vm159_vm0, %v100_v26  ;;  %639 = vmatpush.bf16.msrb.mxu2 %v1261_v39  ;;  %v1317_v54 = vor.u32 %v1512_v52, %v1316_v50  ;;  %v1460_v56 = vld [vmem:[#allocation7 + $0x44] sm:$0xf0]  ;;  %v1244_v57 = vld [vmem:[#allocation7 + $0x150] sm:$0xf]  ;;  %v1181_v58 = vor.u32 %v1478_v47, %v1180_v46  ;;  %v1494_v59 = vld [vmem:[#allocation7 + $0x154] sm:$0xf0] }
  0x22   :  { %652 = vmatpush.bf16.msrb.mxu3 %v1325_v44  ;;  %v1308_v60 = vld [vmem:[#allocation7 + $0x1d0] sm:$0xf]  ;;  %v1510_v61 = vld [vmem:[#allocation7 + $0x1d4] sm:$0xf0]  ;;  %v1172_v62 = vld [vmem:[#allocation7 + $0xc0] sm:$0xf]  ;;  %v1245_v0 = vor.u32 %v1494_v59, %v1244_v57  ;;  %v1109_v1 = vor.u32 %v1460_v56, %v1108_v55 }
  0x23   :  { %614 = vmatpush.bf16.msrb.mxu0 %v1125_v38  ;;  %v1476_v63 = vld [vmem:[#allocation7 + $0xc4] sm:$0xf0]  ;;  %v1309_v2 = vor.u32 %v1510_v61, %v1308_v60  ;;  %v1100_v3 = vld [vmem:[#allocation7 + $0x30] sm:$0xf]  ;;  %v1236_v4 = vld [vmem:[#allocation7 + $0x140] sm:$0xf] }
  0x24   :  { %627 = vmatpush.bf16.msrb.mxu1 %v1189_v43  ;;  %v1492_v5 = vld [vmem:[#allocation7 + $0x144] sm:$0xf0]  ;;  %v1173_v6 = vor.u32 %v1476_v63, %v1172_v62  ;;  %v1458_v7 = vld [vmem:[#allocation7 + $0x34] sm:$0xf0]  ;;  %v1300_v8 = vld [vmem:[#allocation7 + $0x1c0] sm:$0xf] }
  0x25   :  { %640 = vmatpush.bf16.msrb.mxu2 %v1253_v51  ;;  %v1508_v9 = vld [vmem:[#allocation7 + $0x1c4] sm:$0xf0]  ;;  %v1164_v10 = vld [vmem:[#allocation7 + $0xb0] sm:$0xf]  ;;  %v1474_v11 = vld [vmem:[#allocation7 + $0xb4] sm:$0xf0]  ;;  %v1237_v12 = vor.u32 %v1492_v5, %v1236_v4  ;;  %v1101_v13 = vor.u32 %v1458_v7, %v1100_v3 }
  0x26   :  { %653 = vmatpush.bf16.msrb.mxu3 %v1317_v54  ;;  %v1301_v14 = vor.u32 %v1508_v9, %v1300_v8  ;;  %v1092_v15 = vld [vmem:[#allocation7 + $0x20] sm:$0xf]  ;;  %v1228_v16 = vld [vmem:[#allocation7 + $0x130] sm:$0xf]  ;;  %v1490_v17 = vld [vmem:[#allocation7 + $0x134] sm:$0xf0]  ;;  %v1165_v18 = vor.u32 %v1474_v11, %v1164_v10 }
  0x27   :  { %615 = vmatpush.bf16.msrb.mxu0 %v1117_v53  ;;  %v1456_v19 = vld [vmem:[#allocation7 + $0x24] sm:$0xf0]  ;;  %v1292_v20 = vld [vmem:[#allocation7 + $0x1b0] sm:$0xf]  ;;  %v1506_v21 = vld [vmem:[#allocation7 + $0x1b4] sm:$0xf0]  ;;  %v1229_v24 = vor.u32 %v1490_v17, %v1228_v16 }
  0x28   :  { %628 = vmatpush.bf16.msrb.mxu1 %v1181_v58  ;;  %v1156_v22 = vld [vmem:[#allocation7 + $0xa0] sm:$0xf]  ;;  %v1472_v23 = vld [vmem:[#allocation7 + $0xa4] sm:$0xf0]  ;;  %v1093_v25 = vor.u32 %v1456_v19, %v1092_v15  ;;  %v1293_v26 = vor.u32 %v1506_v21, %v1292_v20  ;;  %v1084_v27 = vld [vmem:[#allocation7 + $0x10] sm:$0xf] }
  0x29   :  { %641 = vmatpush.bf16.msrb.mxu2 %v1245_v0  ;;  %v1220_v28 = vld [vmem:[#allocation7 + $0x120] sm:$0xf]  ;;  %v1488_v29 = vld [vmem:[#allocation7 + $0x124] sm:$0xf0]  ;;  %v1157_v30 = vor.u32 %v1472_v23, %v1156_v22  ;;  %v1454_v31 = vld [vmem:[#allocation7 + $0x14] sm:$0xf0] }
  0x2a   :  { %654 = vmatpush.bf16.msrb.mxu3 %v1309_v2  ;;  %v1284_v32 = vld [vmem:[#allocation7 + $0x1a0] sm:$0xf]  ;;  %v1504_v33 = vld [vmem:[#allocation7 + $0x1a4] sm:$0xf0]  ;;  %v1148_v34 = vld [vmem:[#allocation7 + $0x90] sm:$0xf]  ;;  %v1221_v36 = vor.u32 %v1488_v29, %v1220_v28  ;;  %v1085_v39 = vor.u32 %v1454_v31, %v1084_v27 }
  0x2b   :  { %616 = vmatpush.bf16.msrb.mxu0 %v1109_v1  ;;  %v1470_v35 = vld [vmem:[#allocation7 + $0x94] sm:$0xf0]  ;;  %v1076_v37 = vld [vmem:[#allocation7] sm:$0xf]  ;;  %v1452_v38 = vld [vmem:[#allocation7 + $0x4] sm:$0xf0]  ;;  %v1285_v40 = vor.u32 %v1504_v33, %v1284_v32 }
  0x2c   :  { %629 = vmatpush.bf16.msrb.mxu1 %v1173_v6  ;;  %v1140_v41 = vld [vmem:[#allocation7 + $0x80] sm:$0xf]  ;;  %v1468_v42 = vld [vmem:[#allocation7 + $0x84] sm:$0xf0]  ;;  %v1212_v43 = vld [vmem:[#allocation7 + $0x110] sm:$0xf]  ;;  %v1149_v45 = vor.u32 %v1470_v35, %v1148_v34  ;;  %v1077_v53 = vor.u32 %v1452_v38, %v1076_v37 }
  0x2d   :  { %642 = vmatpush.bf16.msrb.mxu2 %v1237_v12  ;;  %v1486_v44 = vld [vmem:[#allocation7 + $0x114] sm:$0xf0]  ;;  %v1465_v46 = vld [vmem:[#allocation7 + $0x74] sm:$0xf]  ;;  %v1276_v47 = vld [vmem:[#allocation7 + $0x190] sm:$0xf]  ;;  %v1141_v59 = vor.u32 %v1468_v42, %v1140_v41 }
  0x2e   :  { %655 = vmatpush.bf16.msrb.mxu3 %v1301_v14  ;;  %v1502_v48 = vld [vmem:[#allocation7 + $0x194] sm:$0xf0]  ;;  %v1134_v49 = vld [vmem:[#allocation7 + $0x78] sm:$0xf0]  ;;  %v1481_v50 = vld [vmem:[#allocation7 + $0xf4] sm:$0xf]  ;;  %v1213_v52 = vor.u32 %v1486_v44, %v1212_v43 }
  0x2f   :  { %617 = vmatpush.bf16.msrb.mxu0 %v1101_v13  ;;  %v1198_v51 = vld [vmem:[#allocation7 + $0xf8] sm:$0xf0]  ;;  %v1277_v54 = vor.u32 %v1502_v48, %v1276_v47  ;;  %v1463_v55 = vld [vmem:[#allocation7 + $0x64] sm:$0xf]  ;;  %v1204_v56 = vld [vmem:[#allocation7 + $0x100] sm:$0xf]  ;;  %v1137_v60 = vor.u32 %v1465_v46, %v1134_v49 }
  0x30   :  { %630 = vmatpush.bf16.msrb.mxu1 %v1165_v18  ;;  %v1484_v57 = vld [vmem:[#allocation7 + $0x104] sm:$0xf0]  ;;  %v1268_v58 = vld [vmem:[#allocation7 + $0x180] sm:$0xf]  ;;  %v1497_v62 = vld [vmem:[#allocation7 + $0x174] sm:$0xf]  ;;  %v1201_v0 = vor.u32 %v1481_v50, %v1198_v51 }
  0x31   :  { %643 = vmatpush.bf16.msrb.mxu2 %v1229_v24  ;;  %v1500_v61 = vld [vmem:[#allocation7 + $0x184] sm:$0xf0]  ;;  %v1262_v63 = vld [vmem:[#allocation7 + $0x178] sm:$0xf0]  ;;  %v1126_v1 = vld [vmem:[#allocation7 + $0x68] sm:$0xf0]  ;;  %v1205_v6 = vor.u32 %v1484_v57, %v1204_v56 }
  0x32   :  { %656 = vmatpush.bf16.msrb.mxu3 %v1293_v26  ;;  %v1513_v2 = vld [vmem:[#allocation7 + $0x1f4] sm:$0xf]  ;;  %v1326_v3 = vld [vmem:[#allocation7 + $0x1f8] sm:$0xf0]  ;;  %v1479_v4 = vld [vmem:[#allocation7 + $0xe4] sm:$0xf]  ;;  %v1269_v7 = vor.u32 %v1500_v61, %v1268_v58  ;;  %v1265_v8 = vor.u32 %v1497_v62, %v1262_v63  ;;  %v1129_v9 = vor.u32 %v1463_v55, %v1126_v1 }
  0x33   :  { %618 = vmatpush.bf16.msrb.mxu0 %v1093_v25  ;;  %v1190_v5 = vld [vmem:[#allocation7 + $0xe8] sm:$0xf0]  ;;  %v1329_v10 = vor.u32 %v1513_v2, %v1326_v3  ;;  %v1461_v12 = vld [vmem:[#allocation7 + $0x54] sm:$0xf]  ;;  %v1118_v13 = vld [vmem:[#allocation7 + $0x58] sm:$0xf0] }
  0x34   :  { %631 = vmatpush.bf16.msrb.mxu1 %v1157_v30  ;;  %v1193_v11 = vor.u32 %v1479_v4, %v1190_v5  ;;  %v1477_v14 = vld [vmem:[#allocation7 + $0xd4] sm:$0xf]  ;;  %v1121_v15 = vor.u32 %v1461_v12, %v1118_v13  ;;  %v1182_v16 = vld [vmem:[#allocation7 + $0xd8] sm:$0xf0]  ;;  %v1495_v18 = vld [vmem:[#allocation7 + $0x164] sm:$0xf] }
  0x35   :  { %644 = vmatpush.bf16.msrb.mxu2 %v1221_v36  ;;  %v1185_v17 = vor.u32 %v1477_v14, %v1182_v16  ;;  %v1254_v19 = vld [vmem:[#allocation7 + $0x168] sm:$0xf0]  ;;  %v1511_v21 = vld [vmem:[#allocation7 + $0x1e4] sm:$0xf]  ;;  %v1493_v30 = vld [vmem:[#allocation7 + $0x154] sm:$0xf] }
  0x36   :  { %657 = vmatpush.bf16.msrb.mxu3 %v1285_v40  ;;  %v1257_v20 = vor.u32 %v1495_v18, %v1254_v19  ;;  %v1318_v22 = vld [vmem:[#allocation7 + $0x1e8] sm:$0xf0]  ;;  %v1459_v24 = vld [vmem:[#allocation7 + $0x44] sm:$0xf]  ;;  %v1246_v31 = vld [vmem:[#allocation7 + $0x158] sm:$0xf0] }
  0x37   :  { %619 = vmatpush.bf16.msrb.mxu0 %v1085_v39  ;;  %v1321_v23 = vor.u32 %v1511_v21, %v1318_v22  ;;  %v1110_v25 = vld [vmem:[#allocation7 + $0x48] sm:$0xf0]  ;;  %v1475_v26 = vld [vmem:[#allocation7 + $0xc4] sm:$0xf]  ;;  %v1509_v32 = vld [vmem:[#allocation7 + $0x1d4] sm:$0xf]  ;;  %v1249_v33 = vor.u32 %v1493_v30, %v1246_v31 }
  0x38   :  { %632 = vmatpush.bf16.msrb.mxu1 %v1149_v45  ;;  %v1113_v27 = vor.u32 %v1459_v24, %v1110_v25  ;;  %v1174_v28 = vld [vmem:[#allocation7 + $0xc8] sm:$0xf0]  ;;  %v1310_v34 = vld [vmem:[#allocation7 + $0x1d8] sm:$0xf0]  ;;  %v1457_v36 = vld [vmem:[#allocation7 + $0x34] sm:$0xf] }
  0x39   :  { %645 = vmatpush.bf16.msrb.mxu2 %v1213_v52  ;;  %v1177_v29 = vor.u32 %v1475_v26, %v1174_v28  ;;  %v1313_v35 = vor.u32 %v1509_v32, %v1310_v34  ;;  %v1102_v37 = vld [vmem:[#allocation7 + $0x38] sm:$0xf0]  ;;  %v1473_v39 = vld [vmem:[#allocation7 + $0xb4] sm:$0xf]  ;;  %v1491_v42 = vld [vmem:[#allocation7 + $0x144] sm:$0xf] }
  0x3a   :  { %658 = vmatpush.bf16.msrb.mxu3 %v1277_v54  ;;  %v1105_v38 = vor.u32 %v1457_v36, %v1102_v37  ;;  %v1166_v40 = vld [vmem:[#allocation7 + $0xb8] sm:$0xf0]  ;;  %v1238_v43 = vld [vmem:[#allocation7 + $0x148] sm:$0xf0]  ;;  %v1507_v44 = vld [vmem:[#allocation7 + $0x1c4] sm:$0xf] }
  0x3b   :  { %620 = vmatpush.bf16.msrb.mxu0 %v1077_v53  ;;  %v1169_v41 = vor.u32 %v1473_v39, %v1166_v40  ;;  %v1241_v45 = vor.u32 %v1491_v42, %v1238_v43  ;;  %v1302_v46 = vld [vmem:[#allocation7 + $0x1c8] sm:$0xf0]  ;;  %v1455_v48 = vld [vmem:[#allocation7 + $0x24] sm:$0xf]  ;;  %v1489_v54 = vld [vmem:[#allocation7 + $0x134] sm:$0xf] }
  0x3c   :  { %633 = vmatpush.bf16.msrb.mxu1 %v1141_v59  ;;  %v1305_v47 = vor.u32 %v1507_v44, %v1302_v46  ;;  %v1094_v49 = vld [vmem:[#allocation7 + $0x28] sm:$0xf0]  ;;  %v1471_v50 = vld [vmem:[#allocation7 + $0xa4] sm:$0xf]  ;;  %v1230_v55 = vld [vmem:[#allocation7 + $0x138] sm:$0xf0] }
  0x3d   :  { %646 = vmatpush.bf16.msrb.mxu2 %v1205_v6  ;;  %v1097_v51 = vor.u32 %v1455_v48, %v1094_v49  ;;  %v1158_v52 = vld [vmem:[#allocation7 + $0xa8] sm:$0xf0]  ;;  %v1505_v56 = vld [vmem:[#allocation7 + $0x1b4] sm:$0xf]  ;;  %v1233_v57 = vor.u32 %v1489_v54, %v1230_v55  ;;  %v1294_v58 = vld [vmem:[#allocation7 + $0x1b8] sm:$0xf0] }
  0x3e   :  { %659 = vmatpush.bf16.msrb.mxu3 %v1269_v7  ;;  %v1161_v53 = vor.u32 %v1471_v50, %v1158_v52  ;;  %v1297_v59 = vor.u32 %v1505_v56, %v1294_v58  ;;  %v1086_v61 = vld [vmem:[#allocation7 + $0x18] sm:$0xf0]  ;;  %v1469_v62 = vld [vmem:[#allocation7 + $0x94] sm:$0xf]  ;;  %v1487_v1 = vld [vmem:[#allocation7 + $0x124] sm:$0xf] }
  0x3f   :  { %665 = vmatpush.bf16.msra.mxu0 %v1137_v60  ;;  %v1453_v60 = vld [vmem:[#allocation7 + $0x14] sm:$0xf]  ;;  %v1222_v2 = vld [vmem:[#allocation7 + $0x128] sm:$0xf0]  ;;  %v1503_v5 = vld [vmem:[#allocation7 + $0x1a4] sm:$0xf] }
  0x40   :  { %678 = vmatpush.bf16.msra.mxu1 %v1201_v0  ;;  %v1089_v63 = vor.u32 %v1453_v60, %v1086_v61  ;;  %v1150_v0 = vld [vmem:[#allocation7 + $0x98] sm:$0xf0]  ;;  %v1225_v4 = vor.u32 %v1487_v1, %v1222_v2  ;;  %v1286_v6 = vld [vmem:[#allocation7 + $0x1a8] sm:$0xf0]  ;;  %v1451_v7 = vld [vmem:[#allocation7 + $0x4] sm:$0xf] }
  0x41   :  { %691 = vmatpush.bf16.msra.mxu2 %v1265_v8  ;;  %v1153_v3 = vor.u32 %v1469_v62, %v1150_v0  ;;  %v1289_v8 = vor.u32 %v1503_v5, %v1286_v6  ;;  %v1485_v14 = vld [vmem:[#allocation7 + $0x114] sm:$0xf]  ;;  %v1278_v18 = vld [vmem:[#allocation7 + $0x198] sm:$0xf0]  ;;  %v1206_v21 = vld [vmem:[#allocation7 + $0x108] sm:$0xf0] }
  0x42   :  { %704 = vmatpush.bf16.msra.mxu3 %v1329_v10  ;;  %v1467_v10 = vld [vmem:[#allocation7 + $0x84] sm:$0xf]  ;;  %v1501_v16 = vld [vmem:[#allocation7 + $0x194] sm:$0xf]  ;;  %v1270_v24 = vld [vmem:[#allocation7 + $0x188] sm:$0xf0] }
  0x43   :  { %666 = vmatpush.bf16.msra.mxu0 %v1129_v9  ;;  %v1078_v9 = vld [vmem:[#allocation7 + $0x8] sm:$0xf0]  ;;  %v1281_v19 = vor.u32 %v1501_v16, %v1278_v18  ;;  %v1499_v22 = vld [vmem:[#allocation7 + $0x184] sm:$0xf]  ;;  %v109_v25 = vld [vmem:[#allocation5] sm:$0xf] }
  0x44   :  { %679 = vmatpush.bf16.msra.mxu1 %v1193_v11  ;;  %v1142_v11 = vld [vmem:[#allocation7 + $0x88] sm:$0xf0]  ;;  %v1081_v12 = vor.u32 %v1451_v7, %v1078_v9  ;;  %v1273_v26 = vor.u32 %v1499_v22, %v1270_v24  ;;  %v112_v28 = vperm.slane %v109_v25, 1  ;;  %v1522_v36 = vld [vmem:[#allocation8 + $0x38] sm:$0xff]  ;;  %v1521_v44 = vld [vmem:[#allocation8 + $0x30] sm:$0xff]  ;;  %vm1000_vm1 = vcmask 523264  }
  0x45   :  { %692 = vmatpush.bf16.msra.mxu2 %v1257_v20  ;;  %v1145_v13 = vor.u32 %v1467_v10, %v1142_v11  ;;  %v1483_v20 = vld [vmem:[#allocation7 + $0x104] sm:$0xf]  ;;  %v1520_v50 = vld [vmem:[#allocation8 + $0x28] sm:$0xff]  ;;  %v1530_v55 = vld [vmem:[#allocation8 + $0x78] sm:$0xff] }
  0x46   :  { %705 = vmatpush.bf16.msra.mxu3 %v1321_v23  ;;  %v1209_v23 = vor.u32 %v1483_v20, %v1206_v21  ;;  %v1519_v54 = vld [vmem:[#allocation8 + $0x20] sm:$0xff]  ;;  %v1518_v56 = vld [vmem:[#allocation8 + $0x18] sm:$0xff]  ;;  %v1529_v58 = vld [vmem:[#allocation8 + $0x70] sm:$0xff] }
  0x47   :  { %667 = vmatpush.bf16.msra.mxu0 %v1121_v15  ;;  %v1214_v15 = vld [vmem:[#allocation7 + $0x118] sm:$0xf0]  ;;  %v1528_v60 = vld [vmem:[#allocation8 + $0x68] sm:$0xff]  ;;  %v1515_v61 = vld [vmem:[#allocation8] sm:$0xff] }
  0x48   :  { %680 = vmatpush.bf16.msra.mxu1 %v1185_v17  ;;  %v1217_v17 = vor.u32 %v1485_v14, %v1214_v15  ;;  %v1527_v62 = vld [vmem:[#allocation8 + $0x60] sm:$0xff]  ;;  %v1525_v0 = vld [vmem:[#allocation8 + $0x50] sm:$0xff]  ;;  %v1524_v1 = vld [vmem:[#allocation8 + $0x48] sm:$0xff] }
  0x49   :  { %693 = vmatpush.bf16.msra.mxu2 %v1249_v33  ;;  %v287_v2 = vld [vmem:[%s1873_s4] sm:$0x3]  ;;  %v1523_v6 = vld [vmem:[#allocation8 + $0x40] sm:$0xff] }
  0x4a   :  { %706 = vmatpush.bf16.msra.mxu3 %v1313_v35  ;;  %v113_v35 = vperm.slane %v109_v25, 2  ;;  %v289_v5 = vperm.slane %v287_v2, 0  ;;  %v1537_v10 = vld [vmem:[%s1876_s7 + $0x30] sm:$0xff]  ;;  %v290_v21 = vperm.slane %v287_v2, 1 }
  0x4b   :  { %668 = vmatpush.bf16.msra.mxu0 %v1113_v27  ;;  %v111_v27 = vperm.slane %v109_v25, 0 }
  0x4c   :  { %681 = vmatpush.bf16.msra.mxu1 %v1177_v29 }
  0x4d   :  { %694 = vmatpush.bf16.msra.mxu2 %v1241_v45 }
  0x4e   :  { %707 = vmatpush.bf16.msra.mxu3 %v1305_v47 }
  0x4f   :  { %669 = vmatpush.bf16.msra.mxu0 %v1105_v38  ;;  %v114_v38 = vperm.slane %v109_v25, 3 }
  0x50   :  { %682 = vmatpush.bf16.msra.mxu1 %v1169_v41 }
  0x51   :  { %695 = vmatpush.bf16.msra.mxu2 %v1233_v57  ;;  %v1517_v57 = vld [vmem:[#allocation8 + $0x10] sm:$0xff] }
  0x52   :  { %708 = vmatpush.bf16.msra.mxu3 %v1297_v59  ;;  %v1516_v59 = vld [vmem:[#allocation8 + $0x8] sm:$0xff] }
  0x53   :  { %670 = vmatpush.bf16.msra.mxu0 %v1097_v51 }
  0x54   :  { %683 = vmatpush.bf16.msra.mxu1 %v1161_v53 }
  0x55   :  { %696 = vmatpush.bf16.msra.mxu2 %v1225_v4 }
  0x56   :  { %709 = vmatpush.bf16.msra.mxu3 %v1289_v8  ;;  %v1538_v8 = vld [vmem:[%s1876_s7 + $0x38] sm:$0xff] }
  0x57   :  { %671 = vmatpush.bf16.msra.mxu0 %v1089_v63  ;;  %v1526_v63 = vld [vmem:[#allocation8 + $0x58] sm:$0xff] }
  0x58   :  { %684 = vmatpush.bf16.msra.mxu1 %v1153_v3 }
  0x59   :  { %697 = vmatpush.bf16.msra.mxu2 %v1217_v17 }
  0x5a   :  { %710 = vmatpush.bf16.msra.mxu3 %v1281_v19 }
  0x5b   :  { %672 = vmatpush.bf16.msra.mxu0 %v1081_v12 }
  0x5c   :  { %685 = vmatpush.bf16.msra.mxu1 %v1145_v13 }
  0x5d   :  { %698 = vmatpush.bf16.msra.mxu2 %v1209_v23 }
  0x5e   :  { %711 = vmatpush.bf16.msra.mxu3 %v1273_v26 }
  0x9b   :  { %v172_v29 = vpop.f32.mrf.mxu0 }
  0x9c   :  { %v173_v30 = vadd.f32 %v172_v29, %v111_v27  ;;  %v185_v31 = vpop.f32.mrf.mxu1 }
  0x9d   :  { %v186_v32 = vadd.f32 %v185_v31, %v112_v28 }
  0x9e   :  { %v215_v33 = vmax.f32 %v173_v30, 0.0 }
  0x9f   :  { %v216_v34 = vmax.f32 %v186_v32, 0.0 }
  0xa0   :  { %v219_v37 = vpack.c.bf16 %v215_v33, %v215_v33 }
  0xa1   :  { %v220_v39 = vpack.c.bf16 %v216_v34, %v216_v34 }
  0xa2   :  { %621 = vmatmul.bf16.vlgmr.msrb.gmra.mxu0 %v219_v37 }
  0xa3   :  { %v198_v40 = vpop.f32.mrf.mxu2  ;;  %634 = vmatmul.bf16.vlgmr.msrb.gmra.mxu1 %v220_v39  ;;  %v174_v43 = vpop.f32.mrf.mxu0  ;;  %853 = vmatpush.bf16.msrb.mxu0 %v1522_v36  ;;  %v1536_v36 = vld [vmem:[%s1876_s7 + $0x28] sm:$0xff] }
  0xa4   :  { %v199_v41 = vadd.f32 %v198_v40, %v113_v35  ;;  %v211_v42 = vpop.f32.mrf.mxu3  ;;  %v187_v46 = vpop.f32.mrf.mxu1  ;;  %866 = vmatpush.bf16.msrb.mxu1 %v1530_v55  ;;  %v1532_v40 = vld [vmem:[%s1876_s7 + $0x8] sm:$0xff]  ;;  %v1541_v43 = vld [vmem:[%s1878_s9 + $0x10] sm:$0xff]  ;;  %v1553_v55 = vld [vmem:[%s1877_s8] ss:$0 sm:$0xff]  ;;  %s1026_s8 = sshll.u32 %s1880_s11, 4  ;;  %s1027_s8 = int_to_ptr.hbm [resolvable:$true] %s1026_s8 }
  0xa5   :  { %v212_v45 = vadd.f32 %v211_v42, %v114_v38  ;;  %v1534_v38 = vld [vmem:[%s1876_s7 + $0x18] sm:$0xff] }
  0xa6   :  { %v217_v47 = vmax.f32 %v199_v41, 0.0  ;;  %v1531_v41 = vld [vmem:[%s1876_s7] sm:$0xff]  ;;  %v1542_v42 = vld [vmem:[%s1878_s9 + $0x18] sm:$0xff] }
  0xa7   :  { %v218_v48 = vmax.f32 %v212_v45, 0.0  ;;  %854 = vmatpush.bf16.msrb.mxu0 %v1521_v44  ;;  %v1540_v44 = vld [vmem:[%s1878_s9 + $0x8] sm:$0xff] }
  0xa8   :  { %v221_v49 = vpack.c.bf16 %v217_v47, %v217_v47  ;;  %867 = vmatpush.bf16.msrb.mxu1 %v1529_v58  ;;  %v1552_v47 = vld [vmem:[%s1875_s6] ss:$0 sm:$0xff] }
  0xa9   :  { %v222_v51 = vpack.c.bf16 %v218_v48, %v218_v48 }
  0xaa   :  { %647 = vmatmul.bf16.vlgmr.msrb.gmra.mxu2 %v221_v49 }
  0xab   :  { %660 = vmatmul.bf16.vlgmr.msrb.gmra.mxu3 %v222_v51  ;;  %v200_v52 = vpop.f32.mrf.mxu2  ;;  %855 = vmatpush.bf16.msrb.mxu0 %v1520_v50 }
  0xac   :  { %v213_v53 = vpop.f32.mrf.mxu3  ;;  %868 = vmatpush.bf16.msrb.mxu1 %v1528_v60  ;;  %949 = vmatpush.bf16.msrb.mxu2 %v1538_v8 }
  0xad   :  { %1008 = vmatpush.bf16.msrb.mxu3 %v1542_v42 }
  0xaf   :  { %856 = vmatpush.bf16.msrb.mxu0 %v1519_v54  ;;  %v1539_v54 = vld [vmem:[%s1878_s9] sm:$0xff]  ;;  %s1693_s9 = smov [#allocation10]  }
  0xb0   :  { %869 = vmatpush.bf16.msrb.mxu1 %v1527_v62  ;;  %950 = vmatpush.bf16.msrb.mxu2 %v1537_v10  ;;  %s1024_s30 = sshll.u32 %s1693_s9, 4  ;;  %s1025_s30 = int_to_ptr.vmem [resolvable:$true] %s1024_s30 }
  0xb1   :  { %1009 = vmatpush.bf16.msrb.mxu3 %v1541_v43 }
  0xb2   :  { %673 = vmatmul.bf16.vlgmr.msra.gmra.mxu0 %v219_v37  ;;  %v1535_v37 = vld [vmem:[%s1876_s7 + $0x20] sm:$0xff] }
  0xb3   :  { %686 = vmatmul.bf16.vlgmr.msra.gmra.mxu1 %v220_v39  ;;  %857 = vmatpush.bf16.msrb.mxu0 %v1518_v56  ;;  %v1533_v39 = vld [vmem:[%s1876_s7 + $0x10] sm:$0xff] }
  0xb4   :  { %870 = vmatpush.bf16.msrb.mxu1 %v1526_v63  ;;  %951 = vmatpush.bf16.msrb.mxu2 %v1536_v36 }
  0xb5   :  { %1010 = vmatpush.bf16.msrb.mxu3 %v1540_v44 }
  0xb7   :  { %858 = vmatpush.bf16.msrb.mxu0 %v1517_v57 }
  0xb8   :  { %871 = vmatpush.bf16.msrb.mxu1 %v1525_v0  ;;  %952 = vmatpush.bf16.msrb.mxu2 %v1535_v37 }
  0xb9   :  { %1011 = vmatpush.bf16.msrb.mxu3 %v1539_v54 }
  0xba   :  { %699 = vmatmul.bf16.vlgmr.msra.gmra.mxu2 %v221_v49 }
  0xbb   :  { %712 = vmatmul.bf16.vlgmr.msra.gmra.mxu3 %v222_v51  ;;  %859 = vmatpush.bf16.msrb.mxu0 %v1516_v59 }
  0xbc   :  { %872 = vmatpush.bf16.msrb.mxu1 %v1524_v1  ;;  %953 = vmatpush.bf16.msrb.mxu2 %v1534_v38 }
  0xbf   :  { %860 = vmatpush.bf16.msrb.mxu0 %v1515_v61  ;;  %v1554_v61 = vld [vmem:[%s1879_s10] ss:$0 sm:$0xff] }
  0xc0   :  { %873 = vmatpush.bf16.msrb.mxu1 %v1523_v6  ;;  %954 = vmatpush.bf16.msrb.mxu2 %v1533_v39 }
  0xc4   :  { %955 = vmatpush.bf16.msrb.mxu2 %v1532_v40 }
  0xc8   :  { %956 = vmatpush.bf16.msrb.mxu2 %v1531_v41 }
 0x11f   :  { %v622_v3 = vpop.f32.mrf.mxu0 }
 0x120   :  { %v635_v4 = vpop.f32.mrf.mxu1  ;;  %v623_v7 = vadd.f32 %v622_v3, %v289_v5 }
 0x122   :  { %v636_v12 = vadd.f32 %v635_v4, %v623_v7 }
 0x127   :  { %v624_v9 = vpop.f32.mrf.mxu0 }
 0x128   :  { %v637_v11 = vpop.f32.mrf.mxu1 }
 0x12d   :  { %v648_v13 = vpop.f32.mrf.mxu2 }
 0x12e   :  { %v649_v14 = vadd.f32 %v648_v13, %v636_v12  ;;  %v661_v15 = vpop.f32.mrf.mxu3 }
 0x12f   :  { %v674_v17 = vpop.f32.mrf.mxu0 }
 0x130   :  { %v662_v16 = vadd.f32 %v661_v15, %v649_v14  ;;  %v687_v18 = vpop.f32.mrf.mxu1  ;;  %v675_v24 = vadd.f32 %v674_v17, %v290_v21 }
 0x132   :  { %v717_v19 = vmax.f32 %v662_v16, 0.0  ;;  %v688_v27 = vadd.f32 %v687_v18, %v675_v24 }
 0x134   :  { %v719_v20 = vpack.c.bf16 %v717_v19, %v717_v19 }
 0x135   :  { %v650_v22 = vpop.f32.mrf.mxu2 }
 0x136   :  { %v663_v23 = vpop.f32.mrf.mxu3  ;;  %861 = vmatmul.bf16.vlgmr.msrb.gmra.mxu0 %v719_v20 }
 0x137   :  { %v676_v25 = vpop.f32.mrf.mxu0 }
 0x138   :  { %v689_v26 = vpop.f32.mrf.mxu1 }
 0x13d   :  { %v700_v28 = vpop.f32.mrf.mxu2 }
 0x13e   :  { %v701_v29 = vadd.f32 %v700_v28, %v688_v27  ;;  %v713_v30 = vpop.f32.mrf.mxu3 }
 0x140   :  { %v714_v31 = vadd.f32 %v713_v30, %v701_v29 }
 0x142   :  { %v718_v32 = vmax.f32 %v714_v31, 0.0 }
 0x144   :  { %v720_v33 = vpack.c.bf16 %v718_v32, %v718_v32 }
 0x145   :  { %v702_v34 = vpop.f32.mrf.mxu2 }
 0x146   :  { %v715_v35 = vpop.f32.mrf.mxu3  ;;  %874 = vmatmul.bf16.vlgmr.msrb.gmra.mxu1 %v720_v33 }
 0x1b3   :  { %v862_v45 = vpop.f32.mrf.mxu0 }
 0x1b4   :  { %v863_v48 = vadd.f32 %v1552_v47, %v862_v45 }
 0x1bb   :  { %v864_v46 = vpop.f32.mrf.mxu0 }
 0x1c3   :  { %v875_v49 = vpop.f32.mrf.mxu1 }
 0x1c4   :  { %v876_v50 = vadd.f32 %v875_v49, %v863_v48 }
 0x1c6   :  { %v879_v51 = vmax.f32 %v876_v50, 0.0 }
 0x1c8   :  { %v880_v52 = vpack.c.bf16 %v879_v51, %v879_v51 }
 0x1ca   :  { %957 = vmatmul.bf16.vlgmr.msrb.gmra.mxu2 %v880_v52 }
 0x1cb   :  { %v877_v53 = vpop.f32.mrf.mxu1 }
 0x24d   :  { %v958_v56 = vpop.f32.mrf.mxu2 }
 0x24e   :  { %v959_v57 = vadd.f32 %v1553_v55, %v958_v56 }
 0x250   :  { %v962_v58 = vmax.f32 %v959_v57, 0.0 }
 0x252   :  { %v963_v59 = vpack.c.bf16 %v962_v58, %v962_v58 }
 0x254   :  { %1442 = vmatmul.msk.bf16.vlgmr.msrb.gmra.mxu3 %vm1000_vm1, %v963_v59 }
 0x255   :  { %v960_v60 = vpop.f32.mrf.mxu2 }
 0x2d7   :  { %v1013_v62 = vpop.f32.mrf.mxu3 }
 0x2d8   :  { %v1014_v63 = vadd.f32 %v1554_v61, %v1013_v62 }
 0x2da   :  { %1555 = vtanh.f32 %v1014_v63 }
 0x2df   :  { %v1015_v0 = vpop.f32.mrf.mxu3 }
 0x2e0   :  { %v1556_v1 = vpop.eup %1555 }
 0x2e1   :  { %1018 = vst [vmem:[#allocation10] sm:$0xff] %v1556_v1 }
 0x2e2   :  { %1029 = dma.vmem_to_hbm [thread:$0]  %s1025_s30, 128, %s1027_s8, [#allocation4]  }
 0x2e3   :  { %1683 = dma.done.wait [#allocation4], 128  }
 0x2e4   :  { %1684 = vsyncadd [#allocation4], 4294967168 }
 0x2e5   :  { %1034 = vsyncpa [#allocation3], 1 }
 0x2e6   :  { %1035 = vsyncpa [#allocation6], 1 }
 0x2e7   :  { %1036 = vsyncpa [#allocation9], 1 }
 0x2e8   :  { %1037 = vsyncpa [#allocation4], 1 }

</bundles_post_ra>
